<compile_context>
chip_gen: v7x
topology: tpu7x:2x2x1
jax: 0.10.0
libtpu: 0.0.40
codegen_flags: <defaults>
</compile_context>

<pallas_src>
import jax
import jax.numpy as jnp
from jax.experimental import pallas as pl
from jax.experimental.pallas import tpu as pltpu

D_IN = 512
D_HID = 512
D_OUT = 10
D_OUT_PAD = 128  # lane-dense padded output width (multiple of 128)


def _round_up(x, m):
    return ((x + m - 1) // m) * m


def _num_tensorcores():
    """2 TensorCores per chip on v7x; v5e/v6e have 1. Default to 1 if unknown."""
    try:
        kind = jax.devices()[0].device_kind.lower()
    except Exception:
        return 1
    return 2 if "v7" in kind else 1


def prepare_params(params):
    """One-time parameter preparation (hoisted out of the per-call path).

    Weights -> bf16 (halves resident VMEM + weight DMA bytes), last layer
    zero-padded 10 -> 128 output lanes (clean MXU N dim, unmasked stores),
    biases -> f32 row vectors.  Weights are stored (in, out), i.e. the
    transpose of PyTorch nn.Linear's (out, in) weight.
    """
    w3 = jnp.zeros((D_HID, D_OUT_PAD), jnp.bfloat16).at[:, :D_OUT].set(
        params["w3"].astype(jnp.bfloat16))
    b3 = jnp.zeros((1, D_OUT_PAD), jnp.float32).at[:, :D_OUT].set(
        params["b3"].reshape(-1).astype(jnp.float32))
    return {
        "w1": params["w1"].astype(jnp.bfloat16),
        "b1": params["b1"].reshape(1, D_HID).astype(jnp.float32),
        "w2": params["w2"].astype(jnp.bfloat16),
        "b2": params["b2"].reshape(1, D_HID).astype(jnp.float32),
        "w3": w3,
        "b3": b3,
    }


def _label_predictor_kernel(h_ref, w1_ref, b1_ref, w2_ref, b2_ref, w3_ref, b3_ref, o_ref):
    # h tile (tm, 512); weights resident in VMEM as bf16, biases f32.
    # MXU matmuls in bf16 with f32 accumulation; epilogue (bias, ReLU) in f32.
    x = h_ref[...].astype(jnp.bfloat16)
    z1 = jnp.dot(x, w1_ref[...], preferred_element_type=jnp.float32) + b1_ref[...]
    z1 = jnp.maximum(z1, 0.0)
    z2 = jnp.dot(z1.astype(jnp.bfloat16), w2_ref[...],
                 preferred_element_type=jnp.float32) + b2_ref[...]
    z2 = jnp.maximum(z2, 0.0)
    z3 = jnp.dot(z2.astype(jnp.bfloat16), w3_ref[...],
                 preferred_element_type=jnp.float32) + b3_ref[...]
    o_ref[...] = z3.astype(o_ref.dtype)


def _pick_tile(B, tm_max, num_cores):
    b_pad = _round_up(B, 8)
    if num_cores <= 1 or b_pad <= 256:
        # 1 TensorCore (v5e/v6e) or tiny batch: single biggest tile covering B.
        # The grid is a sequential loop there; extra steps are pure overhead.
        return min(tm_max, b_pad)
    # 2 TensorCores (v7x): even step count over the "parallel" grid axis,
    # per-step tile >= 256 rows (MXU M dim) whenever the batch allows.
    steps = max(2, 2 * pl.cdiv(b_pad, 2 * tm_max))
    tm = _round_up(pl.cdiv(B, steps), 8)
    tm = max(tm, 256)
    return min(tm, tm_max, b_pad)


def label_predictor(h, prepared, *, tm=None):
    """h: (B, 512) float32 or bfloat16. prepared: output of prepare_params()."""
    B, D = h.shape
    assert D == D_IN

    if tm is None:
        tm = 1024 if B >= 4096 else 512
    tm = _pick_tile(B, tm, _num_tensorcores())
    grid = (pl.cdiv(B, tm),)

    itemsize = jnp.dtype(h.dtype).itemsize
    flops = 2 * B * (D_IN * D_HID + D_HID * D_HID + D_HID * D_OUT_PAD)
    bytes_accessed = (B * D_IN * itemsize + B * D_OUT_PAD * itemsize
                      + (D_IN * D_HID + D_HID * D_HID + D_HID * D_OUT_PAD) * 2
                      + (2 * D_HID + D_OUT_PAD) * 4)

    compiler_kwargs = dict(dimension_semantics=("parallel",))
    if tm >= 2048:
        # Very large tiles brush the default scoped-VMEM limit (16 MiB on v5e).
        compiler_kwargs["vmem_limit_bytes"] = 64 * 1024 * 1024

    out_padded = pl.pallas_call(
        _label_predictor_kernel,
        out_shape=jax.ShapeDtypeStruct((B, D_OUT_PAD), h.dtype),
        grid_spec=pltpu.PrefetchScalarGridSpec(
            num_scalar_prefetch=0,
            grid=grid,
            in_specs=[
                pl.BlockSpec((tm, D_IN), lambda i: (i, 0)),          # h batch tile
                pl.BlockSpec((D_IN, D_HID), lambda i: (0, 0)),       # w1 (resident)
                pl.BlockSpec((1, D_HID), lambda i: (0, 0)),          # b1
                pl.BlockSpec((D_HID, D_HID), lambda i: (0, 0)),      # w2 (resident)
                pl.BlockSpec((1, D_HID), lambda i: (0, 0)),          # b2
                pl.BlockSpec((D_HID, D_OUT_PAD), lambda i: (0, 0)),  # w3 (padded, resident)
                pl.BlockSpec((1, D_OUT_PAD), lambda i: (0, 0)),      # b3 (padded)
            ],
            out_specs=pl.BlockSpec((tm, D_OUT_PAD), lambda i: (i, 0)),
        ),
        compiler_params=pltpu.CompilerParams(**compiler_kwargs),
        cost_estimate=pl.CostEstimate(
            flops=flops, transcendentals=0, bytes_accessed=bytes_accessed),
    )(h, prepared["w1"], prepared["b1"], prepared["w2"], prepared["b2"],
      prepared["w3"], prepared["b3"])

    # TODO(synk): consumers that can take the padded (B, 128) block should fuse
    # this [:, :10] slice into the downstream op to avoid an extra HBM pass.
    return out_padded[:, :D_OUT]


def init_params(key):
    """Deterministic init mimicking nn.Linear's uniform(-1/sqrt(fan_in), 1/sqrt(fan_in)).
    Weights returned as (in, out) = PyTorch weight transposed."""
    ks = jax.random.split(key, 6)

    def lin(kw, kb, fan_in, fan_out):
        bound = 1.0 / jnp.sqrt(fan_in)
        w = jax.random.uniform(kw, (fan_in, fan_out), jnp.float32, -bound, bound)
        b = jax.random.uniform(kb, (fan_out,), jnp.float32, -bound, bound)
        return w, b

    w1, b1 = lin(ks[0], ks[1], D_IN, D_HID)
    w2, b2 = lin(ks[2], ks[3], D_HID, D_HID)
    w3, b3 = lin(ks[4], ks[5], D_HID, D_OUT)
    return {"w1": w1, "b1": b1, "w2": w2, "b2": b2, "w3": w3, "b3": b3}


def _reference(h, p):
    # Reference with the same bf16 matmul inputs / f32 accumulation as the kernel.
    def mm(x, w):
        return jnp.dot(x.astype(jnp.bfloat16), w.astype(jnp.bfloat16),
                       preferred_element_type=jnp.float32)
    z1 = jnp.maximum(mm(h, p["w1"]) + p["b1"], 0.0)
    z2 = jnp.maximum(mm(z1, p["w2"]) + p["b2"], 0.0)
    return mm(z2, p["w3"]) + p["b3"]


if __name__ == "__main__":
    key = jax.random.PRNGKey(0)
    k_h, k_p = jax.random.split(key)
    B = 16
    h = jax.random.normal(k_h, (B, D_IN), jnp.float32)
    params = init_params(k_p)

    # One-time param prep (outside the hot path).
    prepared = jax.tree_util.tree_map(jnp.asarray, prepare_params(params))

    out = label_predictor(h, prepared)
    out = jax.block_until_ready(out)

    ref = _reference(h, params)
    assert out.shape == (B, D_OUT)
    assert jnp.allclose(out, ref, atol=1e-2, rtol=1e-2), "mismatch vs reference"
    print("KERNEL_OK")
</pallas_src>

<mosaic_0001>
module attributes {stable_mosaic.version = 11 : i64} {
  func.func @_label_predictor_kernel(%arg0: i32, %arg1: memref<16x512xf32, #tpu.memory_space<vmem>>, %arg2: memref<512x512xbf16, #tpu.memory_space<vmem>>, %arg3: memref<1x512xf32, #tpu.memory_space<vmem>>, %arg4: memref<512x512xbf16, #tpu.memory_space<vmem>>, %arg5: memref<1x512xf32, #tpu.memory_space<vmem>>, %arg6: memref<512x128xbf16, #tpu.memory_space<vmem>>, %arg7: memref<1x128xf32, #tpu.memory_space<vmem>>, %arg8: memref<16x128xf32, #tpu.memory_space<vmem>>) attributes {dimension_semantics = [#tpu.dimension_semantics<parallel>], iteration_bounds = array<i64: 1>, scalar_prefetch = 0 : i64, scratch_operands = 0 : i64, tpu.core_type = #tpu.core_type<tc>, window_params = [{transform_indices = @transform_0, window_bounds = array<i64: 16, 512>}, {pipeline_mode = #tpu.pipeline_mode<synchronous>, transform_indices = @transform_1, window_bounds = array<i64: 512, 512>}, {pipeline_mode = #tpu.pipeline_mode<synchronous>, transform_indices = @transform_2, window_bounds = array<i64: 1, 512>}, {pipeline_mode = #tpu.pipeline_mode<synchronous>, transform_indices = @transform_3, window_bounds = array<i64: 512, 512>}, {pipeline_mode = #tpu.pipeline_mode<synchronous>, transform_indices = @transform_4, window_bounds = array<i64: 1, 512>}, {pipeline_mode = #tpu.pipeline_mode<synchronous>, transform_indices = @transform_5, window_bounds = array<i64: 512, 128>}, {pipeline_mode = #tpu.pipeline_mode<synchronous>, transform_indices = @transform_6, window_bounds = array<i64: 1, 128>}, {transform_indices = @transform_7, window_bounds = array<i64: 16, 128>}]} {
    %c0 = arith.constant 0 : index
    %c0_0 = arith.constant 0 : index
    %0 = vector.load %arg1[%c0, %c0_0] : memref<16x512xf32, #tpu.memory_space<vmem>>, vector<16x512xf32>
    %1 = arith.truncf %0 : vector<16x512xf32> to vector<16x512xbf16>
    %c0_1 = arith.constant 0 : index
    %c0_2 = arith.constant 0 : index
    %2 = vector.load %arg2[%c0_1, %c0_2] : memref<512x512xbf16, #tpu.memory_space<vmem>>, vector<512x512xbf16>
    %cst = arith.constant dense<0.000000e+00> : vector<16x512xf32>
    %3 = tpu.matmul %1, %2, %cst {dimension_numbers = #tpu.dot_dimension_numbers<[1], [0], [0], [1], [0, 0, 1, 1], [], []>} : vector<16x512xbf16>, vector<512x512xbf16>, vector<16x512xf32> -> vector<16x512xf32>
    %c0_3 = arith.constant 0 : index
    %c0_4 = arith.constant 0 : index
    %4 = vector.load %arg3[%c0_3, %c0_4] : memref<1x512xf32, #tpu.memory_space<vmem>>, vector<1x512xf32>
    %5 = vector.broadcast %4 : vector<1x512xf32> to vector<16x512xf32>
    %6 = arith.addf %3, %5 : vector<16x512xf32>
    %cst_5 = arith.constant 0.000000e+00 : f32
    %7 = vector.broadcast %cst_5 : f32 to vector<16x512xf32>
    %8 = arith.maximumf %6, %7 : vector<16x512xf32>
    %9 = arith.truncf %8 : vector<16x512xf32> to vector<16x512xbf16>
    %c0_6 = arith.constant 0 : index
    %c0_7 = arith.constant 0 : index
    %10 = vector.load %arg4[%c0_6, %c0_7] : memref<512x512xbf16, #tpu.memory_space<vmem>>, vector<512x512xbf16>
    %cst_8 = arith.constant dense<0.000000e+00> : vector<16x512xf32>
    %11 = tpu.matmul %9, %10, %cst_8 {dimension_numbers = #tpu.dot_dimension_numbers<[1], [0], [0], [1], [0, 0, 1, 1], [], []>} : vector<16x512xbf16>, vector<512x512xbf16>, vector<16x512xf32> -> vector<16x512xf32>
    %c0_9 = arith.constant 0 : index
    %c0_10 = arith.constant 0 : index
    %12 = vector.load %arg5[%c0_9, %c0_10] : memref<1x512xf32, #tpu.memory_space<vmem>>, vector<1x512xf32>
    %13 = vector.broadcast %12 : vector<1x512xf32> to vector<16x512xf32>
    %14 = arith.addf %11, %13 : vector<16x512xf32>
    %cst_11 = arith.constant 0.000000e+00 : f32
    %15 = vector.broadcast %cst_11 : f32 to vector<16x512xf32>
    %16 = arith.maximumf %14, %15 : vector<16x512xf32>
    %17 = arith.truncf %16 : vector<16x512xf32> to vector<16x512xbf16>
    %c0_12 = arith.constant 0 : index
    %c0_13 = arith.constant 0 : index
    %18 = vector.load %arg6[%c0_12, %c0_13] : memref<512x128xbf16, #tpu.memory_space<vmem>>, vector<512x128xbf16>
    %cst_14 = arith.constant dense<0.000000e+00> : vector<16x128xf32>
    %19 = tpu.matmul %17, %18, %cst_14 {dimension_numbers = #tpu.dot_dimension_numbers<[1], [0], [0], [1], [0, 0, 1, 1], [], []>} : vector<16x512xbf16>, vector<512x128xbf16>, vector<16x128xf32> -> vector<16x128xf32>
    %c0_15 = arith.constant 0 : index
    %c0_16 = arith.constant 0 : index
    %20 = vector.load %arg7[%c0_15, %c0_16] : memref<1x128xf32, #tpu.memory_space<vmem>>, vector<1x128xf32>
    %21 = vector.broadcast %20 : vector<1x128xf32> to vector<16x128xf32>
    %22 = arith.addf %19, %21 : vector<16x128xf32>
    %c0_17 = arith.constant 0 : index
    %c0_18 = arith.constant 0 : index
    %23 = vector.load %arg8[%c0_17, %c0_18] : memref<16x128xf32, #tpu.memory_space<vmem>>, vector<16x128xf32>
    tpu.vector_store %arg8[%c0_17, %c0_18], %22 {strides = array<i32>} : memref<16x128xf32, #tpu.memory_space<vmem>>, vector<16x128xf32>,
    return
  }
  func.func @transform_0(%arg0: i32) -> (i32, i32) {
    %c0_i32 = arith.constant 0 : i32
    %c0_i32_0 = arith.constant 0 : i32
    return %arg0, %c0_i32 : i32, i32
  }
  func.func @transform_1(%arg0: i32) -> (i32, i32) {
    %c0_i32 = arith.constant 0 : i32
    %c0_i32_0 = arith.constant 0 : i32
    %c0_i32_1 = arith.constant 0 : i32
    return %c0_i32, %c0_i32_0 : i32, i32
  }
  func.func @transform_2(%arg0: i32) -> (i32, i32) {
    %c0_i32 = arith.constant 0 : i32
    %c0_i32_0 = arith.constant 0 : i32
    %c0_i32_1 = arith.constant 0 : i32
    return %c0_i32, %c0_i32_0 : i32, i32
  }
  func.func @transform_3(%arg0: i32) -> (i32, i32) {
    %c0_i32 = arith.constant 0 : i32
    %c0_i32_0 = arith.constant 0 : i32
    %c0_i32_1 = arith.constant 0 : i32
    return %c0_i32, %c0_i32_0 : i32, i32
  }
  func.func @transform_4(%arg0: i32) -> (i32, i32) {
    %c0_i32 = arith.constant 0 : i32
    %c0_i32_0 = arith.constant 0 : i32
    %c0_i32_1 = arith.constant 0 : i32
    return %c0_i32, %c0_i32_0 : i32, i32
  }
  func.func @transform_5(%arg0: i32) -> (i32, i32) {
    %c0_i32 = arith.constant 0 : i32
    %c0_i32_0 = arith.constant 0 : i32
    %c0_i32_1 = arith.constant 0 : i32
    return %c0_i32, %c0_i32_0 : i32, i32
  }
  func.func @transform_6(%arg0: i32) -> (i32, i32) {
    %c0_i32 = arith.constant 0 : i32
    %c0_i32_0 = arith.constant 0 : i32
    %c0_i32_1 = arith.constant 0 : i32
    return %c0_i32, %c0_i32_0 : i32, i32
  }
  func.func @transform_7(%arg0: i32) -> (i32, i32) {
    %c0_i32 = arith.constant 0 : i32
    %c0_i32_0 = arith.constant 0 : i32
    return %arg0, %c0_i32 : i32, i32
  }
}

</mosaic_0001>

<bundles_post_ra>
// kernel: tpu_custom_call.1
= control target key start
LH: loop header
LB: loop body
LE: loop exit
PB: predicated region body
PF: predicated region fallthrough
CT: control target
= control target key end

     0   :  { %12 = vsyncpa [#allocation3], 0  ;;  %s3482_s0 = inlined_call_operand.hbm [shape: f32[16,512], index: 0, kind: input, shape index: {}]   ;;  %s3483_s1 = inlined_call_operand.hbm [shape: bf16[512,512], index: 1, kind: input, shape index: {}]   ;;  %s3484_s2 = inlined_call_operand.vmem [shape: f32[1,512], index: 2, kind: input, shape index: {}]   ;;  %s3485_s3 = inlined_call_operand.hbm [shape: bf16[512,512], index: 3, kind: input, shape index: {}]   ;;  %s3486_s4 = inlined_call_operand.vmem [shape: f32[1,512], index: 4, kind: input, shape index: {}]   ;;  %s3487_s5 = inlined_call_operand.hbm [shape: bf16[512,128], index: 5, kind: input, shape index: {}]   ;;  %s3488_s6 = inlined_call_operand.vmem [shape: f32[1,128], index: 6, kind: input, shape index: {}]   ;;  %s3489_s7 = inlined_call_operand.hbm [shape: f32[16,128], index: 7, kind: output, shape index: {}]  }
   0x1   :  { %13 = vsyncpa [#allocation6], 0 }
   0x2   :  { %14 = vsyncpa [#allocation9], 0 }
   0x3   :  { %15 = vsyncpa [#allocation4], 0  ;;  %s3321_s24 = smov [#allocation5]   ;;  %s3203_s28 = scalar_lea.hbm %s3483_s1, 16384 }
   0x4   :  { %s33_s25 = sshll.u32 %s3321_s24, 4  ;;  %p3204_p0 = scmp.ne.s32.totalorder %s3483_s1, %s3203_s28  ;;  %s34_s25 = int_to_ptr.vmem [resolvable:$true] %s33_s25 }
   0x5   :  { %p3207_p1 = scmp.lt.u32.totalorder %s3203_s28, %s3483_s1 }
   0x7   :  { %p3209_p2 = pnand %p3207_p1, %p3204_p0 }
   0x9   :  { %3212 = shalt.err (!%p3209_p2)
}
   0xa   :  { %s3213_s10 = scalar_lea.vmem %s34_s25, 16384  ;;  %p3218_p4 = scmp.lt.s32.totalorder %s34_s25, %s34_s25 }
   0xb   :  { %p3214_p3 = scmp.ne.s32.totalorder %s34_s25, %s3213_s10  ;;  %p3219_p5 = scmp.lt.s32.totalorder %s3213_s10, %s3213_s10 }
   0xd   :  { %p3220_p6 = por %p3219_p5, %p3218_p4 }
   0xf   :  { %p3221_p7 = pnand %p3220_p6, %p3214_p3 }
  0x11   :  { %3224 = shalt.err (!%p3221_p7)
}
  0x12   :  { %s3322_s11 = smov 256   ;;  %s3323_s12 = smov 16  }
  0x13   :  { %39 = dma.hbm_to_vmem [thread:$0]  %s3483_s1, 16384, %s34_s25, [#allocation6], %s3322_s11, %s3322_s11, %s3323_s12  }
  0x14   :  { %s3324_s15 = smov [#allocation2]   ;;  %s3225_s19 = scalar_lea.hbm %s3482_s0, 1024 }
  0x15   :  { %s21_s16 = sshll.u32 %s3324_s15, 4  ;;  %p3226_p8 = scmp.ne.s32.totalorder %s3482_s0, %s3225_s19  ;;  %s22_s16 = int_to_ptr.vmem [resolvable:$true] %s21_s16 }
  0x16   :  { %p3229_p9 = scmp.lt.u32.totalorder %s3225_s19, %s3482_s0 }
  0x18   :  { %p3231_p10 = pnand %p3229_p9, %p3226_p8 }
  0x1a   :  { %3234 = shalt.err (!%p3231_p10)
}
  0x1b   :  { %s3235_s24 = scalar_lea.vmem %s22_s16, 1024  ;;  %p3240_p12 = scmp.lt.s32.totalorder %s22_s16, %s22_s16 }
  0x1c   :  { %p3236_p11 = scmp.ne.s32.totalorder %s22_s16, %s3235_s24  ;;  %p3241_p13 = scmp.lt.s32.totalorder %s3235_s24, %s3235_s24 }
  0x1e   :  { %p3242_p0 = por %p3241_p13, %p3240_p12 }
  0x20   :  { %p3243_p1 = pnand %p3242_p0, %p3236_p11 }
  0x22   :  { %3246 = shalt.err (!%p3243_p1)
}
  0x23   :  { %s3325_s1 = smov 512   ;;  %s3326_s25 = smov 32  }
  0x24   :  { %27 = dma.hbm_to_vmem [thread:$0]  %s3482_s0, 1024, %s22_s16, [#allocation3], %s3325_s1, %s3325_s1, %s3326_s25  }
  0x25   :  { %s3327_s28 = smov [#allocation7]   ;;  %s3328_s30 = smov [#allocation8]  }
  0x26   :  { %s47_s29 = sshll.u32 %s3327_s28, 4  ;;  %s61_s8 = sshll.u32 %s3328_s30, 4  ;;  %s48_s29 = int_to_ptr.vmem [resolvable:$true] %s47_s29  ;;  %s3401_s8 = int_to_ptr.vmem [resolvable:$true] %s61_s8 }
  0x27   :  { %s3247_s13 = scalar_lea.hbm %s3485_s3, 16384 }
  0x28   :  { %p3248_p2 = scmp.ne.s32.totalorder %s3485_s3, %s3247_s13  ;;  %p3251_p3 = scmp.lt.u32.totalorder %s3247_s13, %s3485_s3 }
  0x2a   :  { %p3253_p4 = pnand %p3251_p3, %p3248_p2 }
  0x2c   :  { %3256 = shalt.err (!%p3253_p4)
}
  0x2d   :  { %s3257_s0 = scalar_lea.vmem %s48_s29, 16384  ;;  %p3262_p6 = scmp.lt.s32.totalorder %s48_s29, %s48_s29 }
  0x2e   :  { %p3258_p5 = scmp.ne.s32.totalorder %s48_s29, %s3257_s0  ;;  %p3263_p7 = scmp.lt.s32.totalorder %s3257_s0, %s3257_s0 }
  0x30   :  { %p3264_p8 = por %p3263_p7, %p3262_p6 }
  0x32   :  { %p3265_p9 = pnand %p3264_p8, %p3258_p5 }
  0x34   :  { %3268 = shalt.err (!%p3265_p9)
}
  0x35   :  { %53 = dma.hbm_to_vmem [thread:$0]  %s3485_s3, 16384, %s48_s29, [#allocation6], %s3322_s11, %s3322_s11, %s3323_s12  }
  0x36   :  { %s3269_s22 = scalar_lea.hbm %s3487_s5, 4096 }
  0x37   :  { %p3270_p10 = scmp.ne.s32.totalorder %s3487_s5, %s3269_s22  ;;  %p3273_p11 = scmp.lt.u32.totalorder %s3269_s22, %s3487_s5 }
  0x39   :  { %p3275_p12 = pnand %p3273_p11, %p3270_p10 }
  0x3b   :  { %3278 = shalt.err (!%p3275_p12)
}
  0x3c   :  { %s3279_s26 = scalar_lea.vmem %s3401_s8, 4096  ;;  %p3284_p0 = scmp.lt.s32.totalorder %s3401_s8, %s3401_s8 }
  0x3d   :  { %p3280_p13 = scmp.ne.s32.totalorder %s3401_s8, %s3279_s26  ;;  %p3285_p1 = scmp.lt.s32.totalorder %s3279_s26, %s3279_s26 }
  0x3f   :  { %p3286_p2 = por %p3285_p1, %p3284_p0 }
  0x41   :  { %p3287_p3 = pnand %p3286_p2, %p3280_p13 }
  0x43   :  { %3290 = shalt.err (!%p3287_p3)
}
  0x44   :  { %s3329_s3 = smov 64   ;;  %s3330_s11 = smov 4  }
  0x45   :  { %67 = dma.hbm_to_vmem [thread:$0]  %s3487_s5, 4096, %s3401_s8, [#allocation9], %s3329_s3, %s3329_s3, %s3330_s11  }
  0x46   :  { %3313 = dma.done.wait [#allocation3], 1024  }
  0x47   :  { %3314 = vsyncadd [#allocation3], 4294966272 }
  0x48   :  { %3315 = dma.done.wait [#allocation6], 32768  }
  0x49   :  { %3316 = vsyncadd [#allocation6], 4294934528 }
  0x4a   :  { %3317 = dma.done.wait [#allocation9], 4096  }
  0x4b   :  { %3318 = vsyncadd [#allocation9], 4294963200  ;;  %v2787_v0 = vld [vmem:[#allocation5 + $0x4] ss:$16 sps:$4 sm:$0xff]   ;;  %v2789_v1 = vld [vmem:[#allocation5 + $0xc] ss:$16 sps:$4 sm:$0xff]  }
  0x4c   :  { %885 = vmatprep.subr.bf16.mxu0 %v2787_v0  ;;  %v2791_v2 = vld [vmem:[#allocation5] ss:$16 sps:$4 sm:$0xff]   ;;  %v2792_v3 = vld [vmem:[#allocation5 + $0x8] ss:$16 sps:$4 sm:$0xff]   ;;  %971 = vmatprep.subr.bf16.mxu1 %v2789_v1  ;;  %v2793_v4 = vld [vmem:[#allocation5 + $0x24] ss:$16 sps:$4 sm:$0xff]  }
  0x4d   :  { %886 = vmatpush1.bf16.msra.mxu0 %v2791_v2  ;;  %972 = vmatpush1.bf16.msra.mxu1 %v2792_v3  ;;  %v2795_v5 = vld [vmem:[#allocation5 + $0x2c] ss:$16 sps:$4 sm:$0xff]   ;;  %v2797_v6 = vld [vmem:[#allocation5 + $0x20] ss:$16 sps:$4 sm:$0xff]   ;;  %v2798_v7 = vld [vmem:[#allocation5 + $0x28] ss:$16 sps:$4 sm:$0xff]  }
  0x4e   :  { %887 = vmatprep.subr.bf16.mxu0 %v2793_v4  ;;  %973 = vmatprep.subr.bf16.mxu1 %v2795_v5  ;;  %v2799_v8 = vld [vmem:[#allocation5 + $0x44] ss:$16 sps:$4 sm:$0xff]   ;;  %v2801_v9 = vld [vmem:[#allocation5 + $0x4c] ss:$16 sps:$4 sm:$0xff]   ;;  %v2803_v10 = vld [vmem:[#allocation5 + $0x40] ss:$16 sps:$4 sm:$0xff]  }
  0x4f   :  { %v2804_v11 = vld [vmem:[#allocation5 + $0x48] ss:$16 sps:$4 sm:$0xff]   ;;  %v2805_v12 = vld [vmem:[#allocation5 + $0x64] ss:$16 sps:$4 sm:$0xff]   ;;  %v2807_v13 = vld [vmem:[#allocation5 + $0x6c] ss:$16 sps:$4 sm:$0xff]  }
  0x50   :  { %v2809_v14 = vld [vmem:[#allocation5 + $0x60] ss:$16 sps:$4 sm:$0xff]   ;;  %v2810_v15 = vld [vmem:[#allocation5 + $0x68] ss:$16 sps:$4 sm:$0xff]   ;;  %v2811_v16 = vld [vmem:[#allocation5 + $0x84] ss:$16 sps:$4 sm:$0xff]  }
  0x51   :  { %888 = vmatpush1.bf16.msra.mxu0 %v2797_v6  ;;  %974 = vmatpush1.bf16.msra.mxu1 %v2798_v7  ;;  %v2813_v17 = vld [vmem:[#allocation5 + $0x8c] ss:$16 sps:$4 sm:$0xff]   ;;  %v2815_v18 = vld [vmem:[#allocation5 + $0x80] ss:$16 sps:$4 sm:$0xff]   ;;  %v2816_v19 = vld [vmem:[#allocation5 + $0x88] ss:$16 sps:$4 sm:$0xff]  }
  0x52   :  { %889 = vmatprep.subr.bf16.mxu0 %v2799_v8  ;;  %975 = vmatprep.subr.bf16.mxu1 %v2801_v9  ;;  %v2817_v20 = vld [vmem:[#allocation5 + $0xa4] ss:$16 sps:$4 sm:$0xff]   ;;  %v2819_v21 = vld [vmem:[#allocation5 + $0xac] ss:$16 sps:$4 sm:$0xff]   ;;  %v2821_v22 = vld [vmem:[#allocation5 + $0xa0] ss:$16 sps:$4 sm:$0xff]  }
  0x53   :  { %v2822_v23 = vld [vmem:[#allocation5 + $0xa8] ss:$16 sps:$4 sm:$0xff]   ;;  %v2823_v24 = vld [vmem:[#allocation5 + $0xc4] ss:$16 sps:$4 sm:$0xff]   ;;  %v2825_v25 = vld [vmem:[#allocation5 + $0xcc] ss:$16 sps:$4 sm:$0xff]  }
  0x54   :  { %v2827_v26 = vld [vmem:[#allocation5 + $0xc0] ss:$16 sps:$4 sm:$0xff]   ;;  %v2828_v27 = vld [vmem:[#allocation5 + $0xc8] ss:$16 sps:$4 sm:$0xff]   ;;  %v2829_v28 = vld [vmem:[#allocation5 + $0xe4] ss:$16 sps:$4 sm:$0xff]  }
  0x55   :  { %890 = vmatpush1.bf16.msra.mxu0 %v2803_v10  ;;  %976 = vmatpush1.bf16.msra.mxu1 %v2804_v11  ;;  %v2831_v29 = vld [vmem:[#allocation5 + $0xec] ss:$16 sps:$4 sm:$0xff]   ;;  %v2833_v30 = vld [vmem:[#allocation5 + $0xe0] ss:$16 sps:$4 sm:$0xff]   ;;  %v2834_v31 = vld [vmem:[#allocation5 + $0xe8] ss:$16 sps:$4 sm:$0xff]  }
  0x56   :  { %891 = vmatprep.subr.bf16.mxu0 %v2805_v12  ;;  %977 = vmatprep.subr.bf16.mxu1 %v2807_v13  ;;  %v2835_v32 = vld [vmem:[#allocation5 + $0x104] ss:$16 sps:$4 sm:$0xff]   ;;  %v2837_v33 = vld [vmem:[#allocation5 + $0x10c] ss:$16 sps:$4 sm:$0xff]   ;;  %v2839_v34 = vld [vmem:[#allocation5 + $0x100] ss:$16 sps:$4 sm:$0xff]  }
  0x57   :  { %v2840_v35 = vld [vmem:[#allocation5 + $0x108] ss:$16 sps:$4 sm:$0xff]   ;;  %v2841_v36 = vld [vmem:[#allocation5 + $0x124] ss:$16 sps:$4 sm:$0xff]   ;;  %v2843_v37 = vld [vmem:[#allocation5 + $0x12c] ss:$16 sps:$4 sm:$0xff]  }
  0x58   :  { %v2845_v38 = vld [vmem:[#allocation5 + $0x120] ss:$16 sps:$4 sm:$0xff]   ;;  %v2846_v39 = vld [vmem:[#allocation5 + $0x128] ss:$16 sps:$4 sm:$0xff]   ;;  %v2847_v40 = vld [vmem:[#allocation5 + $0x144] ss:$16 sps:$4 sm:$0xff]  }
  0x59   :  { %892 = vmatpush1.bf16.msra.mxu0 %v2809_v14  ;;  %978 = vmatpush1.bf16.msra.mxu1 %v2810_v15  ;;  %v2849_v41 = vld [vmem:[#allocation5 + $0x14c] ss:$16 sps:$4 sm:$0xff]   ;;  %v2851_v42 = vld [vmem:[#allocation5 + $0x140] ss:$16 sps:$4 sm:$0xff]   ;;  %v2852_v43 = vld [vmem:[#allocation5 + $0x148] ss:$16 sps:$4 sm:$0xff]  }
  0x5a   :  { %893 = vmatprep.subr.bf16.mxu0 %v2811_v16  ;;  %979 = vmatprep.subr.bf16.mxu1 %v2813_v17  ;;  %v2853_v44 = vld [vmem:[#allocation5 + $0x164] ss:$16 sps:$4 sm:$0xff]   ;;  %v2855_v45 = vld [vmem:[#allocation5 + $0x16c] ss:$16 sps:$4 sm:$0xff]   ;;  %v2857_v48 = vld [vmem:[#allocation5 + $0x160] ss:$16 sps:$4 sm:$0xff]  }
  0x5b   :  { %v84_v46 = vld [vmem:[#allocation2 + $0x8] sm:$0xff]  ;;  %v2859_v51 = vld [vmem:[#allocation5 + $0x184] ss:$16 sps:$4 sm:$0xff]   ;;  %v2863_v53 = vld [vmem:[#allocation5 + $0x180] ss:$16 sps:$4 sm:$0xff]   ;;  %s3331_s8 = smov [#allocation10]  }
  0x5c   :  { %v88_v47 = vld [vmem:[#allocation2 + $0x28] sm:$0xff]  ;;  %v2865_v55 = vld [vmem:[#allocation5 + $0x1a4] ss:$16 sps:$4 sm:$0xff]   ;;  %v2869_v57 = vld [vmem:[#allocation5 + $0x1a0] ss:$16 sps:$4 sm:$0xff]   ;;  %s2395_s9 = sshll.u32 %s3331_s8, 4  ;;  %s2396_s9 = int_to_ptr.vmem [resolvable:$true] %s2395_s9 }
  0x5d   :  { %894 = vmatpush1.bf16.msra.mxu0 %v2815_v18  ;;  %980 = vmatpush1.bf16.msra.mxu1 %v2816_v19  ;;  %v2858_v49 = vld [vmem:[#allocation5 + $0x168] ss:$16 sps:$4 sm:$0xff]   ;;  %v92_v50 = vpack.c.bf16 %v88_v47, %v84_v46  ;;  %v2861_v52 = vld [vmem:[#allocation5 + $0x18c] ss:$16 sps:$4 sm:$0xff]   ;;  %v2871_v59 = vld [vmem:[#allocation5 + $0x1c4] ss:$16 sps:$4 sm:$0xff]   ;;  %p3296_p5 = scmp.lt.s32.totalorder %s2396_s9, %s2396_s9 }
  0x5e   :  { %895 = vmatprep.subr.bf16.mxu0 %v2817_v20  ;;  %981 = vmatprep.subr.bf16.mxu1 %v2819_v21  ;;  %v2864_v54 = vld [vmem:[#allocation5 + $0x188] ss:$16 sps:$4 sm:$0xff]   ;;  %v2867_v56 = vld [vmem:[#allocation5 + $0x1ac] ss:$16 sps:$4 sm:$0xff]   ;;  %v2875_v61 = vld [vmem:[#allocation5 + $0x1c0] ss:$16 sps:$4 sm:$0xff]  }
  0x5f   :  { %917 = vmatprep.mubr.bf16.mxu0 %v92_v50  ;;  %1003 = vmatprep.mubr.bf16.mxu1 %v92_v50  ;;  %v2870_v58 = vld [vmem:[#allocation5 + $0x1a8] ss:$16 sps:$4 sm:$0xff]   ;;  %v2873_v60 = vld [vmem:[#allocation5 + $0x1cc] ss:$16 sps:$4 sm:$0xff]   ;;  %v2877_v63 = vld [vmem:[#allocation5 + $0x1e4] ss:$16 sps:$4 sm:$0xff]  }
  0x60   :  { %v2876_v62 = vld [vmem:[#allocation5 + $0x1c8] ss:$16 sps:$4 sm:$0xff]   ;;  %v2879_v0 = vld [vmem:[#allocation5 + $0x1ec] ss:$16 sps:$4 sm:$0xff]   ;;  %v2881_v1 = vld [vmem:[#allocation5 + $0x1e0] ss:$16 sps:$4 sm:$0xff]  }
  0x61   :  { %896 = vmatpush1.bf16.msra.mxu0 %v2821_v22  ;;  %982 = vmatpush1.bf16.msra.mxu1 %v2822_v23  ;;  %v2882_v2 = vld [vmem:[#allocation5 + $0x1e8] ss:$16 sps:$4 sm:$0xff]   ;;  %v2885_v3 = vld [vmem:[#allocation5 + $0x204] ss:$16 sps:$4 sm:$0xff]   ;;  %v2888_v6 = vld [vmem:[#allocation5 + $0x20c] ss:$16 sps:$4 sm:$0xff]  }
  0x62   :  { %897 = vmatprep.subr.bf16.mxu0 %v2823_v24  ;;  %983 = vmatprep.subr.bf16.mxu1 %v2825_v25  ;;  %v83_v4 = vld [vmem:[#allocation2] sm:$0xff]  ;;  %v2886_v8 = vld [vmem:[#allocation5 + $0x208] ss:$16 sps:$4 sm:$0xff]   ;;  %v2894_v11 = vld [vmem:[#allocation5 + $0x22c] ss:$16 sps:$4 sm:$0xff]  }
  0x63   :  { %v87_v5 = vld [vmem:[#allocation2 + $0x20] sm:$0xff]  ;;  %v2892_v13 = vld [vmem:[#allocation5 + $0x228] ss:$16 sps:$4 sm:$0xff]   ;;  %v2900_v15 = vld [vmem:[#allocation5 + $0x24c] ss:$16 sps:$4 sm:$0xff]  }
  0x64   :  { %v2883_v7 = vld [vmem:[#allocation5 + $0x200] ss:$16 sps:$4 sm:$0xff]   ;;  %v91_v9 = vpack.c.bf16 %v87_v5, %v83_v4  ;;  %v2891_v10 = vld [vmem:[#allocation5 + $0x224] ss:$16 sps:$4 sm:$0xff]   ;;  %v2898_v17 = vld [vmem:[#allocation5 + $0x248] ss:$16 sps:$4 sm:$0xff]  }
  0x65   :  { %898 = vmatpush1.bf16.msra.mxu0 %v2827_v26  ;;  %984 = vmatpush1.bf16.msra.mxu1 %v2828_v27  ;;  %v2889_v12 = vld [vmem:[#allocation5 + $0x220] ss:$16 sps:$4 sm:$0xff]   ;;  %v2897_v14 = vld [vmem:[#allocation5 + $0x244] ss:$16 sps:$4 sm:$0xff]   ;;  %v2906_v19 = vld [vmem:[#allocation5 + $0x26c] ss:$16 sps:$4 sm:$0xff]  }
  0x66   :  { %899 = vmatprep.subr.bf16.mxu0 %v2829_v28  ;;  %985 = vmatprep.subr.bf16.mxu1 %v2831_v29  ;;  %v2895_v16 = vld [vmem:[#allocation5 + $0x240] ss:$16 sps:$4 sm:$0xff]   ;;  %v2903_v18 = vld [vmem:[#allocation5 + $0x264] ss:$16 sps:$4 sm:$0xff]   ;;  %v2904_v21 = vld [vmem:[#allocation5 + $0x268] ss:$16 sps:$4 sm:$0xff]  }
  0x67   :  { %v2901_v20 = vld [vmem:[#allocation5 + $0x260] ss:$16 sps:$4 sm:$0xff]   ;;  %v2909_v22 = vld [vmem:[#allocation5 + $0x284] ss:$16 sps:$4 sm:$0xff]   ;;  %v2912_v23 = vld [vmem:[#allocation5 + $0x28c] ss:$16 sps:$4 sm:$0xff]  }
  0x68   :  { %v2907_v24 = vld [vmem:[#allocation5 + $0x280] ss:$16 sps:$4 sm:$0xff]   ;;  %v2910_v25 = vld [vmem:[#allocation5 + $0x288] ss:$16 sps:$4 sm:$0xff]   ;;  %v2915_v26 = vld [vmem:[#allocation5 + $0x2a4] ss:$16 sps:$4 sm:$0xff]  }
  0x69   :  { %900 = vmatpush1.bf16.msra.mxu0 %v2833_v30  ;;  %986 = vmatpush1.bf16.msra.mxu1 %v2834_v31  ;;  %v2918_v27 = vld [vmem:[#allocation5 + $0x2ac] ss:$16 sps:$4 sm:$0xff]   ;;  %v2913_v28 = vld [vmem:[#allocation5 + $0x2a0] ss:$16 sps:$4 sm:$0xff]   ;;  %v2916_v29 = vld [vmem:[#allocation5 + $0x2a8] ss:$16 sps:$4 sm:$0xff]  }
  0x6a   :  { %901 = vmatprep.subr.bf16.mxu0 %v2835_v32  ;;  %987 = vmatprep.subr.bf16.mxu1 %v2837_v33  ;;  %v2921_v30 = vld [vmem:[#allocation5 + $0x2c4] ss:$16 sps:$4 sm:$0xff]   ;;  %v2924_v31 = vld [vmem:[#allocation5 + $0x2cc] ss:$16 sps:$4 sm:$0xff]   ;;  %v2919_v33 = vld [vmem:[#allocation5 + $0x2c0] ss:$16 sps:$4 sm:$0xff]  }
  0x6b   :  { %v86_v32 = vld [vmem:[#allocation2 + $0x18] sm:$0xff]  ;;  %v2937_v47 = vld [vmem:[#allocation5 + $0x320] ss:$16 sps:$4 sm:$0xff]   ;;  %v2975_v5 = vld [vmem:[#allocation5 + $0x3e4] ss:$16 sps:$4 sm:$0xff]  }
  0x6c   :  { %v2942_v46 = vld [vmem:[#allocation5 + $0x32c] ss:$16 sps:$4 sm:$0xff]   ;;  %v2970_v4 = vld [vmem:[#allocation5 + $0x3c8] ss:$16 sps:$4 sm:$0xff]  }
  0x6d   :  { %902 = vmatpush1.bf16.msra.mxu0 %v2839_v34  ;;  %988 = vmatpush1.bf16.msra.mxu1 %v2840_v35  ;;  %v2922_v34 = vld [vmem:[#allocation5 + $0x2c8] ss:$16 sps:$4 sm:$0xff]   ;;  %v2948_v50 = vld [vmem:[#allocation5 + $0x34c] ss:$16 sps:$4 sm:$0xff]  }
  0x6e   :  { %903 = vmatprep.subr.bf16.mxu0 %v2841_v36  ;;  %989 = vmatprep.subr.bf16.mxu1 %v2843_v37  ;;  %v90_v35 = vld [vmem:[#allocation2 + $0x38] sm:$0xff]  ;;  %v2927_v36 = vld [vmem:[#allocation5 + $0x2e4] ss:$16 sps:$4 sm:$0xff]  }
  0x6f   :  { %v94_v37 = vpack.c.bf16 %v90_v35, %v86_v32  ;;  %v3011_v32 = vld [vmem:[#allocation7 + $0xa4] ss:$16 sps:$4 sm:$0xff]   ;;  %v3012_v35 = vld [vmem:[#allocation7 + $0xa8] ss:$16 sps:$4 sm:$0xff]  }
  0x71   :  { %904 = vmatpush1.bf16.msra.mxu0 %v2845_v38  ;;  %990 = vmatpush1.bf16.msra.mxu1 %v2846_v39  ;;  %v2930_v38 = vld [vmem:[#allocation5 + $0x2ec] ss:$16 sps:$4 sm:$0xff]   ;;  %v2925_v39 = vld [vmem:[#allocation5 + $0x2e0] ss:$16 sps:$4 sm:$0xff]  }
  0x72   :  { %905 = vmatprep.subr.bf16.mxu0 %v2847_v40  ;;  %991 = vmatprep.subr.bf16.mxu1 %v2849_v41  ;;  %v2928_v40 = vld [vmem:[#allocation5 + $0x2e8] ss:$16 sps:$4 sm:$0xff]   ;;  %v2933_v41 = vld [vmem:[#allocation5 + $0x304] ss:$16 sps:$4 sm:$0xff]  }
  0x75   :  { %906 = vmatpush1.bf16.msra.mxu0 %v2851_v42  ;;  %992 = vmatpush1.bf16.msra.mxu1 %v2852_v43  ;;  %v2936_v42 = vld [vmem:[#allocation5 + $0x30c] ss:$16 sps:$4 sm:$0xff]   ;;  %v2931_v43 = vld [vmem:[#allocation5 + $0x300] ss:$16 sps:$4 sm:$0xff]  }
  0x76   :  { %907 = vmatprep.subr.bf16.mxu0 %v2853_v44  ;;  %993 = vmatprep.subr.bf16.mxu1 %v2855_v45  ;;  %v2934_v44 = vld [vmem:[#allocation5 + $0x308] ss:$16 sps:$4 sm:$0xff]   ;;  %v2939_v45 = vld [vmem:[#allocation5 + $0x324] ss:$16 sps:$4 sm:$0xff]  }
  0x79   :  { %908 = vmatpush1.bf16.msra.mxu0 %v2857_v48  ;;  %994 = vmatpush1.bf16.msra.mxu1 %v2858_v49  ;;  %v2940_v48 = vld [vmem:[#allocation5 + $0x328] ss:$16 sps:$4 sm:$0xff]   ;;  %v2945_v49 = vld [vmem:[#allocation5 + $0x344] ss:$16 sps:$4 sm:$0xff]  }
  0x7a   :  { %909 = vmatprep.subr.bf16.mxu0 %v2859_v51  ;;  %995 = vmatprep.subr.bf16.mxu1 %v2861_v52  ;;  %v2943_v51 = vld [vmem:[#allocation5 + $0x340] ss:$16 sps:$4 sm:$0xff]   ;;  %v2946_v52 = vld [vmem:[#allocation5 + $0x348] ss:$16 sps:$4 sm:$0xff]  }
  0x7d   :  { %910 = vmatpush1.bf16.msra.mxu0 %v2863_v53  ;;  %996 = vmatpush1.bf16.msra.mxu1 %v2864_v54  ;;  %v2951_v53 = vld [vmem:[#allocation5 + $0x364] ss:$16 sps:$4 sm:$0xff]   ;;  %v2954_v54 = vld [vmem:[#allocation5 + $0x36c] ss:$16 sps:$4 sm:$0xff]  }
  0x7e   :  { %911 = vmatprep.subr.bf16.mxu0 %v2865_v55  ;;  %997 = vmatprep.subr.bf16.mxu1 %v2867_v56  ;;  %v2949_v55 = vld [vmem:[#allocation5 + $0x360] ss:$16 sps:$4 sm:$0xff]   ;;  %v2952_v56 = vld [vmem:[#allocation5 + $0x368] ss:$16 sps:$4 sm:$0xff]  }
  0x81   :  { %912 = vmatpush1.bf16.msra.mxu0 %v2869_v57  ;;  %998 = vmatpush1.bf16.msra.mxu1 %v2870_v58  ;;  %v2957_v57 = vld [vmem:[#allocation5 + $0x384] ss:$16 sps:$4 sm:$0xff]   ;;  %v2960_v58 = vld [vmem:[#allocation5 + $0x38c] ss:$16 sps:$4 sm:$0xff]  }
  0x82   :  { %913 = vmatprep.subr.bf16.mxu0 %v2871_v59  ;;  %999 = vmatprep.subr.bf16.mxu1 %v2873_v60  ;;  %v2955_v59 = vld [vmem:[#allocation5 + $0x380] ss:$16 sps:$4 sm:$0xff]   ;;  %v2958_v60 = vld [vmem:[#allocation5 + $0x388] ss:$16 sps:$4 sm:$0xff]  }
  0x85   :  { %914 = vmatpush1.bf16.msra.mxu0 %v2875_v61  ;;  %1000 = vmatpush1.bf16.msra.mxu1 %v2876_v62  ;;  %v2963_v61 = vld [vmem:[#allocation5 + $0x3a4] ss:$16 sps:$4 sm:$0xff]   ;;  %v2966_v62 = vld [vmem:[#allocation5 + $0x3ac] ss:$16 sps:$4 sm:$0xff]  }
  0x86   :  { %915 = vmatprep.subr.bf16.mxu0 %v2877_v63  ;;  %1001 = vmatprep.subr.bf16.mxu1 %v2879_v0  ;;  %v2961_v63 = vld [vmem:[#allocation5 + $0x3a0] ss:$16 sps:$4 sm:$0xff]   ;;  %v2964_v0 = vld [vmem:[#allocation5 + $0x3a8] ss:$16 sps:$4 sm:$0xff]  }
  0x89   :  { %916 = vmatpush1.bf16.msra.mxu0 %v2881_v1  ;;  %1002 = vmatpush1.bf16.msra.mxu1 %v2882_v2  ;;  %v2969_v1 = vld [vmem:[#allocation5 + $0x3c4] ss:$16 sps:$4 sm:$0xff]   ;;  %v2972_v2 = vld [vmem:[#allocation5 + $0x3cc] ss:$16 sps:$4 sm:$0xff]  }
  0x8a   :  { %928 = vmatprep.subr.bf16.mxu0 %v2885_v3  ;;  %1014 = vmatprep.subr.bf16.mxu1 %v2888_v6  ;;  %v2967_v3 = vld [vmem:[#allocation5 + $0x3c0] ss:$16 sps:$4 sm:$0xff]   ;;  %v2978_v6 = vld [vmem:[#allocation5 + $0x3ec] ss:$16 sps:$4 sm:$0xff]  }
  0x8c   :  { %918 = vmatmul.mubr.bf16.vlgmr.msra.gmra.mrb[0].mxu0 %v91_v9  ;;  %1004 = vmatmul.mubr.bf16.vlgmr.msra.gmra.mrb[0].mxu1 %v91_v9  ;;  %v85_v9 = vld [vmem:[#allocation2 + $0x10] sm:$0xff] }
  0x8d   :  { %929 = vmatpush1.bf16.msra.mxu0 %v2883_v7  ;;  %1015 = vmatpush1.bf16.msra.mxu1 %v2886_v8  ;;  %v2973_v7 = vld [vmem:[#allocation5 + $0x3e0] ss:$16 sps:$4 sm:$0xff]   ;;  %v2976_v8 = vld [vmem:[#allocation5 + $0x3e8] ss:$16 sps:$4 sm:$0xff]  }
  0x8e   :  { %930 = vmatprep.subr.bf16.mxu0 %v2891_v10  ;;  %1016 = vmatprep.subr.bf16.mxu1 %v2894_v11  ;;  %v89_v10 = vld [vmem:[#allocation2 + $0x30] sm:$0xff] }
  0x8f   :  { %960 = vmatprep.mubr.bf16.mxu0 %v94_v37  ;;  %1046 = vmatprep.mubr.bf16.mxu1 %v94_v37  ;;  %v2981_v11 = vld [vmem:[#allocation7 + $0x4] ss:$16 sps:$4 sm:$0xff]   ;;  %v3020_v37 = vld [vmem:[#allocation7 + $0xcc] ss:$16 sps:$4 sm:$0xff]  }
  0x91   :  { %931 = vmatpush1.bf16.msra.mxu0 %v2889_v12  ;;  %1017 = vmatpush1.bf16.msra.mxu1 %v2892_v13  ;;  %v2984_v12 = vld [vmem:[#allocation7 + $0xc] ss:$16 sps:$4 sm:$0xff]   ;;  %v2979_v13 = vld [vmem:[#allocation7] ss:$16 sps:$4 sm:$0xff]  }
  0x92   :  { %932 = vmatprep.subr.bf16.mxu0 %v2897_v14  ;;  %1018 = vmatprep.subr.bf16.mxu1 %v2900_v15  ;;  %v2982_v14 = vld [vmem:[#allocation7 + $0x8] ss:$16 sps:$4 sm:$0xff]   ;;  %v93_v15 = vpack.c.bf16 %v89_v10, %v85_v9  ;;  %v3074_v9 = vld [vmem:[#allocation7 + $0x1ec] ss:$16 sps:$4 sm:$0xff]   ;;  %v3069_v10 = vld [vmem:[#allocation7 + $0x1e0] ss:$16 sps:$4 sm:$0xff]  }
  0x95   :  { %933 = vmatpush1.bf16.msra.mxu0 %v2895_v16  ;;  %1019 = vmatpush1.bf16.msra.mxu1 %v2898_v17  ;;  %v2987_v16 = vld [vmem:[#allocation7 + $0x24] ss:$16 sps:$4 sm:$0xff]   ;;  %v2990_v17 = vld [vmem:[#allocation7 + $0x2c] ss:$16 sps:$4 sm:$0xff]  }
  0x96   :  { %934 = vmatprep.subr.bf16.mxu0 %v2903_v18  ;;  %1020 = vmatprep.subr.bf16.mxu1 %v2906_v19  ;;  %v2985_v18 = vld [vmem:[#allocation7 + $0x20] ss:$16 sps:$4 sm:$0xff]   ;;  %v2988_v19 = vld [vmem:[#allocation7 + $0x28] ss:$16 sps:$4 sm:$0xff]  }
  0x99   :  { %935 = vmatpush1.bf16.msra.mxu0 %v2901_v20  ;;  %1021 = vmatpush1.bf16.msra.mxu1 %v2904_v21  ;;  %v2993_v20 = vld [vmem:[#allocation7 + $0x44] ss:$16 sps:$4 sm:$0xff]   ;;  %v2996_v21 = vld [vmem:[#allocation7 + $0x4c] ss:$16 sps:$4 sm:$0xff]  }
  0x9a   :  { %936 = vmatprep.subr.bf16.mxu0 %v2909_v22  ;;  %1022 = vmatprep.subr.bf16.mxu1 %v2912_v23  ;;  %v2991_v22 = vld [vmem:[#allocation7 + $0x40] ss:$16 sps:$4 sm:$0xff]   ;;  %v2994_v23 = vld [vmem:[#allocation7 + $0x48] ss:$16 sps:$4 sm:$0xff]  }
  0x9d   :  { %937 = vmatpush1.bf16.msra.mxu0 %v2907_v24  ;;  %1023 = vmatpush1.bf16.msra.mxu1 %v2910_v25  ;;  %v2999_v24 = vld [vmem:[#allocation7 + $0x64] ss:$16 sps:$4 sm:$0xff]   ;;  %v3002_v25 = vld [vmem:[#allocation7 + $0x6c] ss:$16 sps:$4 sm:$0xff]  }
  0x9e   :  { %938 = vmatprep.subr.bf16.mxu0 %v2915_v26  ;;  %1024 = vmatprep.subr.bf16.mxu1 %v2918_v27  ;;  %v2997_v26 = vld [vmem:[#allocation7 + $0x60] ss:$16 sps:$4 sm:$0xff]   ;;  %v3000_v27 = vld [vmem:[#allocation7 + $0x68] ss:$16 sps:$4 sm:$0xff]  }
  0xa1   :  { %939 = vmatpush1.bf16.msra.mxu0 %v2913_v28  ;;  %1025 = vmatpush1.bf16.msra.mxu1 %v2916_v29  ;;  %v3005_v28 = vld [vmem:[#allocation7 + $0x84] ss:$16 sps:$4 sm:$0xff]   ;;  %v3008_v29 = vld [vmem:[#allocation7 + $0x8c] ss:$16 sps:$4 sm:$0xff]  }
  0xa2   :  { %940 = vmatprep.subr.bf16.mxu0 %v2921_v30  ;;  %1026 = vmatprep.subr.bf16.mxu1 %v2924_v31  ;;  %v3003_v30 = vld [vmem:[#allocation7 + $0x80] ss:$16 sps:$4 sm:$0xff]   ;;  %v3006_v31 = vld [vmem:[#allocation7 + $0x88] ss:$16 sps:$4 sm:$0xff]  }
  0xa5   :  { %941 = vmatpush1.bf16.msra.mxu0 %v2919_v33  ;;  %1027 = vmatpush1.bf16.msra.mxu1 %v2922_v34  ;;  %v3014_v33 = vld [vmem:[#allocation7 + $0xac] ss:$16 sps:$4 sm:$0xff]   ;;  %v3009_v34 = vld [vmem:[#allocation7 + $0xa0] ss:$16 sps:$4 sm:$0xff]  }
  0xa6   :  { %942 = vmatprep.subr.bf16.mxu0 %v2927_v36  ;;  %1028 = vmatprep.subr.bf16.mxu1 %v2930_v38  ;;  %v3017_v36 = vld [vmem:[#allocation7 + $0xc4] ss:$16 sps:$4 sm:$0xff]   ;;  %v3015_v38 = vld [vmem:[#allocation7 + $0xc0] ss:$16 sps:$4 sm:$0xff]  }
  0xa9   :  { %943 = vmatpush1.bf16.msra.mxu0 %v2925_v39  ;;  %1029 = vmatpush1.bf16.msra.mxu1 %v2928_v40  ;;  %v3018_v39 = vld [vmem:[#allocation7 + $0xc8] ss:$16 sps:$4 sm:$0xff]   ;;  %v3023_v40 = vld [vmem:[#allocation7 + $0xe4] ss:$16 sps:$4 sm:$0xff]  }
  0xaa   :  { %944 = vmatprep.subr.bf16.mxu0 %v2933_v41  ;;  %1030 = vmatprep.subr.bf16.mxu1 %v2936_v42  ;;  %v3026_v41 = vld [vmem:[#allocation7 + $0xec] ss:$16 sps:$4 sm:$0xff]   ;;  %v3021_v42 = vld [vmem:[#allocation7 + $0xe0] ss:$16 sps:$4 sm:$0xff]  }
  0xad   :  { %945 = vmatpush1.bf16.msra.mxu0 %v2931_v43  ;;  %1031 = vmatpush1.bf16.msra.mxu1 %v2934_v44  ;;  %v3024_v43 = vld [vmem:[#allocation7 + $0xe8] ss:$16 sps:$4 sm:$0xff]   ;;  %v3029_v44 = vld [vmem:[#allocation7 + $0x104] ss:$16 sps:$4 sm:$0xff]  }
  0xae   :  { %946 = vmatprep.subr.bf16.mxu0 %v2939_v45  ;;  %1032 = vmatprep.subr.bf16.mxu1 %v2942_v46  ;;  %v3032_v45 = vld [vmem:[#allocation7 + $0x10c] ss:$16 sps:$4 sm:$0xff]   ;;  %v3027_v46 = vld [vmem:[#allocation7 + $0x100] ss:$16 sps:$4 sm:$0xff]  }
  0xb1   :  { %947 = vmatpush1.bf16.msra.mxu0 %v2937_v47  ;;  %1033 = vmatpush1.bf16.msra.mxu1 %v2940_v48  ;;  %v3030_v47 = vld [vmem:[#allocation7 + $0x108] ss:$16 sps:$4 sm:$0xff]   ;;  %v3035_v48 = vld [vmem:[#allocation7 + $0x124] ss:$16 sps:$4 sm:$0xff]  }
  0xb2   :  { %948 = vmatprep.subr.bf16.mxu0 %v2945_v49  ;;  %1034 = vmatprep.subr.bf16.mxu1 %v2948_v50  ;;  %v3038_v49 = vld [vmem:[#allocation7 + $0x12c] ss:$16 sps:$4 sm:$0xff]   ;;  %v3033_v50 = vld [vmem:[#allocation7 + $0x120] ss:$16 sps:$4 sm:$0xff]  }
  0xb5   :  { %949 = vmatpush1.bf16.msra.mxu0 %v2943_v51  ;;  %1035 = vmatpush1.bf16.msra.mxu1 %v2946_v52  ;;  %v3036_v51 = vld [vmem:[#allocation7 + $0x128] ss:$16 sps:$4 sm:$0xff]   ;;  %v3041_v52 = vld [vmem:[#allocation7 + $0x144] ss:$16 sps:$4 sm:$0xff]  }
  0xb6   :  { %950 = vmatprep.subr.bf16.mxu0 %v2951_v53  ;;  %1036 = vmatprep.subr.bf16.mxu1 %v2954_v54  ;;  %v3044_v53 = vld [vmem:[#allocation7 + $0x14c] ss:$16 sps:$4 sm:$0xff]   ;;  %v3039_v54 = vld [vmem:[#allocation7 + $0x140] ss:$16 sps:$4 sm:$0xff]  }
  0xb9   :  { %951 = vmatpush1.bf16.msra.mxu0 %v2949_v55  ;;  %1037 = vmatpush1.bf16.msra.mxu1 %v2952_v56  ;;  %v3042_v55 = vld [vmem:[#allocation7 + $0x148] ss:$16 sps:$4 sm:$0xff]   ;;  %v3047_v56 = vld [vmem:[#allocation7 + $0x164] ss:$16 sps:$4 sm:$0xff]  }
  0xba   :  { %952 = vmatprep.subr.bf16.mxu0 %v2957_v57  ;;  %1038 = vmatprep.subr.bf16.mxu1 %v2960_v58  ;;  %v3050_v57 = vld [vmem:[#allocation7 + $0x16c] ss:$16 sps:$4 sm:$0xff]   ;;  %v3045_v58 = vld [vmem:[#allocation7 + $0x160] ss:$16 sps:$4 sm:$0xff]  }
  0xbd   :  { %953 = vmatpush1.bf16.msra.mxu0 %v2955_v59  ;;  %1039 = vmatpush1.bf16.msra.mxu1 %v2958_v60  ;;  %v3048_v59 = vld [vmem:[#allocation7 + $0x168] ss:$16 sps:$4 sm:$0xff]   ;;  %v3053_v60 = vld [vmem:[#allocation7 + $0x184] ss:$16 sps:$4 sm:$0xff]  }
  0xbe   :  { %954 = vmatprep.subr.bf16.mxu0 %v2963_v61  ;;  %1040 = vmatprep.subr.bf16.mxu1 %v2966_v62  ;;  %v3056_v61 = vld [vmem:[#allocation7 + $0x18c] ss:$16 sps:$4 sm:$0xff]   ;;  %v3051_v62 = vld [vmem:[#allocation7 + $0x180] ss:$16 sps:$4 sm:$0xff]  }
  0xc1   :  { %955 = vmatpush1.bf16.msra.mxu0 %v2961_v63  ;;  %1041 = vmatpush1.bf16.msra.mxu1 %v2964_v0  ;;  %v3054_v63 = vld [vmem:[#allocation7 + $0x188] ss:$16 sps:$4 sm:$0xff]   ;;  %v3059_v0 = vld [vmem:[#allocation7 + $0x1a4] ss:$16 sps:$4 sm:$0xff]  }
  0xc2   :  { %956 = vmatprep.subr.bf16.mxu0 %v2969_v1  ;;  %1042 = vmatprep.subr.bf16.mxu1 %v2972_v2  ;;  %v3062_v1 = vld [vmem:[#allocation7 + $0x1ac] ss:$16 sps:$4 sm:$0xff]   ;;  %v3057_v2 = vld [vmem:[#allocation7 + $0x1a0] ss:$16 sps:$4 sm:$0xff]  }
  0xc5   :  { %957 = vmatpush1.bf16.msra.mxu0 %v2967_v3  ;;  %1043 = vmatpush1.bf16.msra.mxu1 %v2970_v4  ;;  %v3060_v3 = vld [vmem:[#allocation7 + $0x1a8] ss:$16 sps:$4 sm:$0xff]   ;;  %v3065_v4 = vld [vmem:[#allocation7 + $0x1c4] ss:$16 sps:$4 sm:$0xff]  }
  0xc6   :  { %958 = vmatprep.subr.bf16.mxu0 %v2975_v5  ;;  %1044 = vmatprep.subr.bf16.mxu1 %v2978_v6  ;;  %v3068_v5 = vld [vmem:[#allocation7 + $0x1cc] ss:$16 sps:$4 sm:$0xff]   ;;  %v3063_v6 = vld [vmem:[#allocation7 + $0x1c0] ss:$16 sps:$4 sm:$0xff]  }
  0xc9   :  { %959 = vmatpush1.bf16.msra.mxu0 %v2973_v7  ;;  %1045 = vmatpush1.bf16.msra.mxu1 %v2976_v8  ;;  %v3066_v7 = vld [vmem:[#allocation7 + $0x1c8] ss:$16 sps:$4 sm:$0xff]   ;;  %v3071_v8 = vld [vmem:[#allocation7 + $0x1e4] ss:$16 sps:$4 sm:$0xff]  }
  0xca   :  { %1859 = vmatprep.subr.bf16.mxu0 %v2981_v11  ;;  %1945 = vmatprep.subr.bf16.mxu1 %v2984_v12  ;;  %v3072_v11 = vld [vmem:[#allocation7 + $0x1e8] ss:$16 sps:$4 sm:$0xff]   ;;  %v3077_v12 = vld [vmem:[#allocation7 + $0x204] ss:$16 sps:$4 sm:$0xff]  }
  0xcc   :  { %961 = vmatmul.mubr.bf16.vlgmr.msra.gmra.mrb[0].mxu0 %v93_v15  ;;  %1047 = vmatmul.mubr.bf16.vlgmr.msra.gmra.mrb[0].mxu1 %v93_v15 }
  0xcd   :  { %1860 = vmatpush1.bf16.msra.mxu0 %v2979_v13  ;;  %1946 = vmatpush1.bf16.msra.mxu1 %v2982_v14  ;;  %v3080_v13 = vld [vmem:[#allocation7 + $0x20c] ss:$16 sps:$4 sm:$0xff]   ;;  %v225_v14 = vlaneseq }
  0xce   :  { %1861 = vmatprep.subr.bf16.mxu0 %v2987_v16  ;;  %1947 = vmatprep.subr.bf16.mxu1 %v2990_v17 }
  0xcf   :  { %v3435_v15 = vshrl.u32 %v225_v14, 7  ;;  %v3114_v14 = vld [vmem:[#allocation7 + $0x2c8] ss:$16 sps:$4 sm:$0xff]  }
  0xd1   :  { %1862 = vmatpush1.bf16.msra.mxu0 %v2985_v18  ;;  %1948 = vmatpush1.bf16.msra.mxu1 %v2988_v19  ;;  %v227_v16 = vsub.s32 0, %v3435_v15  ;;  %v235_v17 = vsub.s32 2, %v3435_v15  ;;  %v223_v18 = vld [vmem:[%s3484_s2] sm:$0xf]  ;;  %v231_v19 = vsub.s32 1, %v3435_v15 }
  0xd2   :  { %1863 = vmatprep.subr.bf16.mxu0 %v2993_v20  ;;  %1949 = vmatprep.subr.bf16.mxu1 %v2996_v21  ;;  %v239_v20 = vsub.s32 3, %v3435_v15 }
  0xd3   :  { %v228_v21 = vrot.slane %v223_v18, %v227_v16 }
  0xd5   :  { %1864 = vmatpush1.bf16.msra.mxu0 %v2991_v22  ;;  %1950 = vmatpush1.bf16.msra.mxu1 %v2994_v23  ;;  %v236_v22 = vrot.slane %v223_v18, %v235_v17  ;;  %v232_v23 = vrot.slane %v223_v18, %v231_v19 }
  0xd6   :  { %1865 = vmatprep.subr.bf16.mxu0 %v2999_v24  ;;  %1951 = vmatprep.subr.bf16.mxu1 %v3002_v25  ;;  %v240_v24 = vrot.slane %v223_v18, %v239_v20  ;;  %v3119_v18 = vld [vmem:[#allocation7 + $0x2e4] ss:$16 sps:$4 sm:$0xff]  }
  0xd9   :  { %1866 = vmatpush1.bf16.msra.mxu0 %v2997_v26  ;;  %1952 = vmatpush1.bf16.msra.mxu1 %v3000_v27 }
  0xda   :  { %1867 = vmatprep.subr.bf16.mxu0 %v3005_v28  ;;  %1953 = vmatprep.subr.bf16.mxu1 %v3008_v29 }
  0xdd   :  { %1868 = vmatpush1.bf16.msra.mxu0 %v3003_v30  ;;  %1954 = vmatpush1.bf16.msra.mxu1 %v3006_v31 }
  0xde   :  { %1869 = vmatprep.subr.bf16.mxu0 %v3011_v32  ;;  %1955 = vmatprep.subr.bf16.mxu1 %v3014_v33 }
  0xe1   :  { %1870 = vmatpush1.bf16.msra.mxu0 %v3009_v34  ;;  %1956 = vmatpush1.bf16.msra.mxu1 %v3012_v35 }
  0xe2   :  { %1871 = vmatprep.subr.bf16.mxu0 %v3017_v36  ;;  %1957 = vmatprep.subr.bf16.mxu1 %v3020_v37 }
  0xe5   :  { %1872 = vmatpush1.bf16.msra.mxu0 %v3015_v38  ;;  %1958 = vmatpush1.bf16.msra.mxu1 %v3018_v39 }
  0xe6   :  { %1873 = vmatprep.subr.bf16.mxu0 %v3023_v40  ;;  %1959 = vmatprep.subr.bf16.mxu1 %v3026_v41 }
  0xe9   :  { %1874 = vmatpush1.bf16.msra.mxu0 %v3021_v42  ;;  %1960 = vmatpush1.bf16.msra.mxu1 %v3024_v43 }
  0xea   :  { %1875 = vmatprep.subr.bf16.mxu0 %v3029_v44  ;;  %1961 = vmatprep.subr.bf16.mxu1 %v3032_v45 }
  0xed   :  { %1876 = vmatpush1.bf16.msra.mxu0 %v3027_v46  ;;  %1962 = vmatpush1.bf16.msra.mxu1 %v3030_v47 }
  0xee   :  { %1877 = vmatprep.subr.bf16.mxu0 %v3035_v48  ;;  %1963 = vmatprep.subr.bf16.mxu1 %v3038_v49 }
  0xf1   :  { %1878 = vmatpush1.bf16.msra.mxu0 %v3033_v50  ;;  %1964 = vmatpush1.bf16.msra.mxu1 %v3036_v51 }
  0xf2   :  { %1879 = vmatprep.subr.bf16.mxu0 %v3041_v52  ;;  %1965 = vmatprep.subr.bf16.mxu1 %v3044_v53  ;;  %v3075_v53 = vld [vmem:[#allocation7 + $0x200] ss:$16 sps:$4 sm:$0xff]  }
  0xf5   :  { %1880 = vmatpush1.bf16.msra.mxu0 %v3039_v54  ;;  %1966 = vmatpush1.bf16.msra.mxu1 %v3042_v55  ;;  %v3078_v54 = vld [vmem:[#allocation7 + $0x208] ss:$16 sps:$4 sm:$0xff]   ;;  %v3083_v55 = vld [vmem:[#allocation7 + $0x224] ss:$16 sps:$4 sm:$0xff]  }
  0xf6   :  { %1881 = vmatprep.subr.bf16.mxu0 %v3047_v56  ;;  %1967 = vmatprep.subr.bf16.mxu1 %v3050_v57  ;;  %v3086_v56 = vld [vmem:[#allocation7 + $0x22c] ss:$16 sps:$4 sm:$0xff]   ;;  %v3081_v57 = vld [vmem:[#allocation7 + $0x220] ss:$16 sps:$4 sm:$0xff]  }
  0xf9   :  { %1882 = vmatpush1.bf16.msra.mxu0 %v3045_v58  ;;  %1968 = vmatpush1.bf16.msra.mxu1 %v3048_v59  ;;  %v3084_v58 = vld [vmem:[#allocation7 + $0x228] ss:$16 sps:$4 sm:$0xff]   ;;  %v3089_v59 = vld [vmem:[#allocation7 + $0x244] ss:$16 sps:$4 sm:$0xff]  }
  0xfa   :  { %1883 = vmatprep.subr.bf16.mxu0 %v3053_v60  ;;  %1969 = vmatprep.subr.bf16.mxu1 %v3056_v61  ;;  %v3092_v60 = vld [vmem:[#allocation7 + $0x24c] ss:$16 sps:$4 sm:$0xff]   ;;  %v3087_v61 = vld [vmem:[#allocation7 + $0x240] ss:$16 sps:$4 sm:$0xff]  }
  0xfd   :  { %1884 = vmatpush1.bf16.msra.mxu0 %v3051_v62  ;;  %1970 = vmatpush1.bf16.msra.mxu1 %v3054_v63  ;;  %v3090_v62 = vld [vmem:[#allocation7 + $0x248] ss:$16 sps:$4 sm:$0xff]   ;;  %v3095_v63 = vld [vmem:[#allocation7 + $0x264] ss:$16 sps:$4 sm:$0xff]  }
  0xfe   :  { %1885 = vmatprep.subr.bf16.mxu0 %v3059_v0  ;;  %1971 = vmatprep.subr.bf16.mxu1 %v3062_v1  ;;  %v3098_v0 = vld [vmem:[#allocation7 + $0x26c] ss:$16 sps:$4 sm:$0xff]   ;;  %v3093_v1 = vld [vmem:[#allocation7 + $0x260] ss:$16 sps:$4 sm:$0xff]  }
 0x101   :  { %1886 = vmatpush1.bf16.msra.mxu0 %v3057_v2  ;;  %1972 = vmatpush1.bf16.msra.mxu1 %v3060_v3  ;;  %v3096_v2 = vld [vmem:[#allocation7 + $0x268] ss:$16 sps:$4 sm:$0xff]   ;;  %v3101_v3 = vld [vmem:[#allocation7 + $0x284] ss:$16 sps:$4 sm:$0xff]  }
 0x102   :  { %1887 = vmatprep.subr.bf16.mxu0 %v3065_v4  ;;  %1973 = vmatprep.subr.bf16.mxu1 %v3068_v5  ;;  %v3104_v4 = vld [vmem:[#allocation7 + $0x28c] ss:$16 sps:$4 sm:$0xff]   ;;  %v3099_v5 = vld [vmem:[#allocation7 + $0x280] ss:$16 sps:$4 sm:$0xff]  }
 0x105   :  { %1888 = vmatpush1.bf16.msra.mxu0 %v3063_v6  ;;  %1974 = vmatpush1.bf16.msra.mxu1 %v3066_v7  ;;  %v3102_v6 = vld [vmem:[#allocation7 + $0x288] ss:$16 sps:$4 sm:$0xff]   ;;  %v3107_v7 = vld [vmem:[#allocation7 + $0x2a4] ss:$16 sps:$4 sm:$0xff]  }
 0x106   :  { %1889 = vmatprep.subr.bf16.mxu0 %v3071_v8  ;;  %1975 = vmatprep.subr.bf16.mxu1 %v3074_v9  ;;  %v3110_v8 = vld [vmem:[#allocation7 + $0x2ac] ss:$16 sps:$4 sm:$0xff]   ;;  %v3105_v9 = vld [vmem:[#allocation7 + $0x2a0] ss:$16 sps:$4 sm:$0xff]  }
 0x109   :  { %1890 = vmatpush1.bf16.msra.mxu0 %v3069_v10  ;;  %1976 = vmatpush1.bf16.msra.mxu1 %v3072_v11  ;;  %v3108_v10 = vld [vmem:[#allocation7 + $0x2a8] ss:$16 sps:$4 sm:$0xff]   ;;  %v3113_v11 = vld [vmem:[#allocation7 + $0x2c4] ss:$16 sps:$4 sm:$0xff]  }
 0x10a   :  { %1902 = vmatprep.subr.bf16.mxu0 %v3077_v12  ;;  %1988 = vmatprep.subr.bf16.mxu1 %v3080_v13  ;;  %v3116_v12 = vld [vmem:[#allocation7 + $0x2cc] ss:$16 sps:$4 sm:$0xff]   ;;  %v3111_v13 = vld [vmem:[#allocation7 + $0x2c0] ss:$16 sps:$4 sm:$0xff]  }
 0x19f   :  { %v962_v25 = vpop.f32.mrb[0].mxu0  ;;  %v1048_v26 = vpop.f32.mrb[0].mxu1 }
 0x1a0   :  { %v2742_v27 = vadd.f32 %v962_v25, %v228_v21  ;;  %v2746_v28 = vadd.f32 %v1048_v26, %v236_v22  ;;  %v964_v29 = vpop.f32.mrb[1].mxu0  ;;  %v1050_v30 = vpop.f32.mrb[1].mxu1  ;;  %v3128_v25 = vld [vmem:[#allocation7 + $0x30c] ss:$16 sps:$4 sm:$0xff]   ;;  %v3123_v26 = vld [vmem:[#allocation7 + $0x300] ss:$16 sps:$4 sm:$0xff]  }
 0x1a1   :  { %v2743_v31 = vadd.f32 %v964_v29, %v232_v23  ;;  %v2747_v32 = vadd.f32 %v1050_v30, %v240_v24  ;;  %v966_v33 = vpop.f32.mrb[2].mxu0  ;;  %v1052_v34 = vpop.f32.mrb[2].mxu1  ;;  %v3134_v29 = vld [vmem:[#allocation7 + $0x32c] ss:$16 sps:$4 sm:$0xff]   ;;  %v3129_v30 = vld [vmem:[#allocation7 + $0x320] ss:$16 sps:$4 sm:$0xff]  }
 0x1a2   :  { %v2744_v35 = vadd.f32 %v966_v33, %v228_v21  ;;  %v2748_v36 = vadd.f32 %v1052_v34, %v236_v22  ;;  %v968_v37 = vpop.f32.mrb[3].mxu0  ;;  %v1054_v38 = vpop.f32.mrb[3].mxu1  ;;  %v1057_v41 = vmax.f32 %v2742_v27, 0.0  ;;  %v1059_v42 = vmax.f32 %v2746_v28, 0.0  ;;  %v3122_v21 = vld [vmem:[#allocation7 + $0x2ec] ss:$16 sps:$4 sm:$0xff]  }
 0x1a3   :  { %v2745_v39 = vadd.f32 %v968_v37, %v232_v23  ;;  %v2749_v40 = vadd.f32 %v1054_v38, %v240_v24  ;;  %v1058_v45 = vmax.f32 %v2743_v31, 0.0  ;;  %v1060_v46 = vmax.f32 %v2747_v32, 0.0  ;;  %v3117_v22 = vld [vmem:[#allocation7 + $0x2e0] ss:$16 sps:$4 sm:$0xff]   ;;  %v3120_v23 = vld [vmem:[#allocation7 + $0x2e8] ss:$16 sps:$4 sm:$0xff]  }
 0x1a4   :  { %v1061_v43 = vmax.f32 %v2744_v35, 0.0  ;;  %v1063_v44 = vmax.f32 %v2748_v36, 0.0  ;;  %v3125_v24 = vld [vmem:[#allocation7 + $0x304] ss:$16 sps:$4 sm:$0xff]   ;;  %v3126_v27 = vld [vmem:[#allocation7 + $0x308] ss:$16 sps:$4 sm:$0xff]  }
 0x1a5   :  { %v1062_v47 = vmax.f32 %v2745_v39, 0.0  ;;  %v1064_v48 = vmax.f32 %v2749_v40, 0.0  ;;  %v3131_v28 = vld [vmem:[#allocation7 + $0x324] ss:$16 sps:$4 sm:$0xff]   ;;  %v3132_v31 = vld [vmem:[#allocation7 + $0x328] ss:$16 sps:$4 sm:$0xff]  }
 0x1a6   :  { %v1065_v49 = vpack.c.bf16 %v1061_v43, %v1057_v41  ;;  %v3452_v50 = vpack.c.bf16 %v1063_v44, %v1059_v42  ;;  %v3137_v32 = vld [vmem:[#allocation7 + $0x344] ss:$16 sps:$4 sm:$0xff]   ;;  %v3140_v33 = vld [vmem:[#allocation7 + $0x34c] ss:$16 sps:$4 sm:$0xff]   ;;  %v3135_v34 = vld [vmem:[#allocation7 + $0x340] ss:$16 sps:$4 sm:$0xff]  }
 0x1a7   :  { %v1066_v51 = vpack.c.bf16 %v1062_v47, %v1058_v45  ;;  %v1068_v52 = vpack.c.bf16 %v1064_v48, %v1060_v46  ;;  %v3138_v35 = vld [vmem:[#allocation7 + $0x348] ss:$16 sps:$4 sm:$0xff]   ;;  %v3143_v36 = vld [vmem:[#allocation7 + $0x364] ss:$16 sps:$4 sm:$0xff]   ;;  %v3146_v37 = vld [vmem:[#allocation7 + $0x36c] ss:$16 sps:$4 sm:$0xff]  }
 0x1a8   :  { %v3141_v38 = vld [vmem:[#allocation7 + $0x360] ss:$16 sps:$4 sm:$0xff]   ;;  %v3144_v39 = vld [vmem:[#allocation7 + $0x368] ss:$16 sps:$4 sm:$0xff]   ;;  %v3149_v40 = vld [vmem:[#allocation7 + $0x384] ss:$16 sps:$4 sm:$0xff]  }
 0x1a9   :  { %1891 = vmatprep.mubr.bf16.mxu0 %v1066_v51  ;;  %1977 = vmatprep.mubr.bf16.mxu1 %v1066_v51  ;;  %v3152_v41 = vld [vmem:[#allocation7 + $0x38c] ss:$16 sps:$4 sm:$0xff]   ;;  %v3147_v42 = vld [vmem:[#allocation7 + $0x380] ss:$16 sps:$4 sm:$0xff]   ;;  %v3150_v43 = vld [vmem:[#allocation7 + $0x388] ss:$16 sps:$4 sm:$0xff]  }
 0x1aa   :  { %1892 = vmatmul.mubr.bf16.vlgmr.msra.gmra.mrb[4].mxu0 %v1065_v49  ;;  %1978 = vmatmul.mubr.bf16.vlgmr.msra.gmra.mrb[4].mxu1 %v1065_v49  ;;  %v3155_v44 = vld [vmem:[#allocation7 + $0x3a4] ss:$16 sps:$4 sm:$0xff]   ;;  %v3158_v45 = vld [vmem:[#allocation7 + $0x3ac] ss:$16 sps:$4 sm:$0xff]   ;;  %v3153_v46 = vld [vmem:[#allocation7 + $0x3a0] ss:$16 sps:$4 sm:$0xff]  }
 0x1ab   :  { %1903 = vmatpush1.bf16.msra.mxu0 %v3075_v53  ;;  %1989 = vmatpush1.bf16.msra.mxu1 %v3078_v54  ;;  %v3156_v47 = vld [vmem:[#allocation7 + $0x3a8] ss:$16 sps:$4 sm:$0xff]   ;;  %v3161_v48 = vld [vmem:[#allocation7 + $0x3c4] ss:$16 sps:$4 sm:$0xff]   ;;  %v3164_v49 = vld [vmem:[#allocation7 + $0x3cc] ss:$16 sps:$4 sm:$0xff]  }
 0x1ac   :  { %1934 = vmatprep.mubr.bf16.mxu0 %v1068_v52  ;;  %2020 = vmatprep.mubr.bf16.mxu1 %v1068_v52  ;;  %v3159_v51 = vld [vmem:[#allocation7 + $0x3c0] ss:$16 sps:$4 sm:$0xff]   ;;  %v3162_v52 = vld [vmem:[#allocation7 + $0x3c8] ss:$16 sps:$4 sm:$0xff]   ;;  %v3167_v53 = vld [vmem:[#allocation7 + $0x3e4] ss:$16 sps:$4 sm:$0xff]  }
 0x1ad   :  { %1904 = vmatprep.subr.bf16.mxu0 %v3083_v55  ;;  %1990 = vmatprep.subr.bf16.mxu1 %v3086_v56  ;;  %v3170_v54 = vld [vmem:[#allocation7 + $0x3ec] ss:$16 sps:$4 sm:$0xff]   ;;  %v3165_v55 = vld [vmem:[#allocation7 + $0x3e0] ss:$16 sps:$4 sm:$0xff]   ;;  %v3168_v56 = vld [vmem:[#allocation7 + $0x3e8] ss:$16 sps:$4 sm:$0xff]  }
 0x1af   :  { %1905 = vmatpush1.bf16.msra.mxu0 %v3081_v57  ;;  %1991 = vmatpush1.bf16.msra.mxu1 %v3084_v58  ;;  %v3171_v57 = vld [vmem:[#allocation8 + $0x40] sm:$0xff]  }
 0x1b0   :  { %1906 = vmatprep.subr.bf16.mxu0 %v3089_v59  ;;  %1992 = vmatprep.subr.bf16.mxu1 %v3092_v60  ;;  %v3172_v58 = vld [vmem:[#allocation8 + $0xc0] sm:$0xff]  }
 0x1b1   :  { %v3173_v59 = vld [vmem:[#allocation8] sm:$0xff]  }
 0x1b2   :  { %v3174_v60 = vld [vmem:[#allocation8 + $0x80] sm:$0xff]  }
 0x1b3   :  { %1907 = vmatpush1.bf16.msra.mxu0 %v3087_v61  ;;  %1993 = vmatpush1.bf16.msra.mxu1 %v3090_v62  ;;  %v3175_v61 = vld [vmem:[#allocation8 + $0x48] sm:$0xff]  }
 0x1b4   :  { %1908 = vmatprep.subr.bf16.mxu0 %v3095_v63  ;;  %1994 = vmatprep.subr.bf16.mxu1 %v3098_v0  ;;  %v3176_v62 = vld [vmem:[#allocation8 + $0xc8] sm:$0xff]  }
 0x1b5   :  { %v3177_v63 = vld [vmem:[#allocation8 + $0x8] sm:$0xff]  }
 0x1b6   :  { %v3178_v0 = vld [vmem:[#allocation8 + $0x88] sm:$0xff]  }
 0x1b7   :  { %1909 = vmatpush1.bf16.msra.mxu0 %v3093_v1  ;;  %1995 = vmatpush1.bf16.msra.mxu1 %v3096_v2  ;;  %v3179_v1 = vld [vmem:[#allocation8 + $0x50] sm:$0xff]  }
 0x1b8   :  { %1910 = vmatprep.subr.bf16.mxu0 %v3101_v3  ;;  %1996 = vmatprep.subr.bf16.mxu1 %v3104_v4  ;;  %v3180_v2 = vld [vmem:[#allocation8 + $0xd0] sm:$0xff]  }
 0x1b9   :  { %v3181_v3 = vld [vmem:[#allocation8 + $0x10] sm:$0xff]  }
 0x1ba   :  { %v3182_v4 = vld [vmem:[#allocation8 + $0x90] sm:$0xff]  }
 0x1bb   :  { %1911 = vmatpush1.bf16.msra.mxu0 %v3099_v5  ;;  %1997 = vmatpush1.bf16.msra.mxu1 %v3102_v6  ;;  %v3183_v5 = vld [vmem:[#allocation8 + $0x58] sm:$0xff]  }
 0x1bc   :  { %1912 = vmatprep.subr.bf16.mxu0 %v3107_v7  ;;  %1998 = vmatprep.subr.bf16.mxu1 %v3110_v8  ;;  %v3184_v6 = vld [vmem:[#allocation8 + $0xd8] sm:$0xff]   ;;  %v3187_v8 = vld [vmem:[#allocation8 + $0x60] sm:$0xff]  }
 0x1bd   :  { %v3185_v7 = vld [vmem:[#allocation8 + $0x18] sm:$0xff]  }
 0x1bf   :  { %1913 = vmatpush1.bf16.msra.mxu0 %v3105_v9  ;;  %1999 = vmatpush1.bf16.msra.mxu1 %v3108_v10  ;;  %v3188_v9 = vld [vmem:[#allocation8 + $0xe0] sm:$0xff]  }
 0x1c0   :  { %1914 = vmatprep.subr.bf16.mxu0 %v3113_v11  ;;  %2000 = vmatprep.subr.bf16.mxu1 %v3116_v12  ;;  %v3189_v10 = vld [vmem:[#allocation8 + $0x20] sm:$0xff]   ;;  %v3191_v12 = vld [vmem:[#allocation8 + $0x68] sm:$0xff]  }
 0x1c1   :  { %v3190_v11 = vld [vmem:[#allocation8 + $0xa0] sm:$0xff]  }
 0x1c3   :  { %1915 = vmatpush1.bf16.msra.mxu0 %v3111_v13  ;;  %2001 = vmatpush1.bf16.msra.mxu1 %v3114_v14  ;;  %v3192_v13 = vld [vmem:[#allocation8 + $0xe8] sm:$0xff]  }
 0x1c4   :  { %1916 = vmatprep.subr.bf16.mxu0 %v3119_v18  ;;  %2002 = vmatprep.subr.bf16.mxu1 %v3122_v21  ;;  %v3193_v14 = vld [vmem:[#allocation8 + $0x28] sm:$0xff]   ;;  %v3195_v21 = vld [vmem:[#allocation8 + $0x70] sm:$0xff]  }
 0x1c5   :  { %v3194_v18 = vld [vmem:[#allocation8 + $0xa8] sm:$0xff]  }
 0x1c7   :  { %1917 = vmatpush1.bf16.msra.mxu0 %v3117_v22  ;;  %2003 = vmatpush1.bf16.msra.mxu1 %v3120_v23  ;;  %v3196_v22 = vld [vmem:[#allocation8 + $0xf0] sm:$0xff]  }
 0x1c8   :  { %1918 = vmatprep.subr.bf16.mxu0 %v3125_v24  ;;  %2004 = vmatprep.subr.bf16.mxu1 %v3128_v25  ;;  %v3197_v23 = vld [vmem:[#allocation8 + $0x30] sm:$0xff]   ;;  %v3199_v25 = vld [vmem:[#allocation8 + $0x78] sm:$0xff]  }
 0x1c9   :  { %v3198_v24 = vld [vmem:[#allocation8 + $0xb0] sm:$0xff]  }
 0x1cb   :  { %1919 = vmatpush1.bf16.msra.mxu0 %v3123_v26  ;;  %2005 = vmatpush1.bf16.msra.mxu1 %v3126_v27  ;;  %v3200_v26 = vld [vmem:[#allocation8 + $0xf8] sm:$0xff]  }
 0x1cc   :  { %1920 = vmatprep.subr.bf16.mxu0 %v3131_v28  ;;  %2006 = vmatprep.subr.bf16.mxu1 %v3134_v29  ;;  %v3201_v27 = vld [vmem:[#allocation8 + $0x38] sm:$0xff]   ;;  %v1197_v29 = vld [vmem:[%s3486_s4] sm:$0xf] }
 0x1cd   :  { %v3202_v28 = vld [vmem:[#allocation8 + $0xb8] sm:$0xff]  }
 0x1cf   :  { %1921 = vmatpush1.bf16.msra.mxu0 %v3129_v30  ;;  %2007 = vmatpush1.bf16.msra.mxu1 %v3132_v31  ;;  %v1202_v30 = vrot.slane %v1197_v29, %v227_v16  ;;  %v1210_v31 = vrot.slane %v1197_v29, %v235_v17 }
 0x1d0   :  { %1922 = vmatprep.subr.bf16.mxu0 %v3137_v32  ;;  %2008 = vmatprep.subr.bf16.mxu1 %v3140_v33  ;;  %v1206_v32 = vrot.slane %v1197_v29, %v231_v19  ;;  %v1214_v33 = vrot.slane %v1197_v29, %v239_v20 }
 0x1d3   :  { %1923 = vmatpush1.bf16.msra.mxu0 %v3135_v34  ;;  %2009 = vmatpush1.bf16.msra.mxu1 %v3138_v35 }
 0x1d4   :  { %1924 = vmatprep.subr.bf16.mxu0 %v3143_v36  ;;  %2010 = vmatprep.subr.bf16.mxu1 %v3146_v37 }
 0x1d7   :  { %1925 = vmatpush1.bf16.msra.mxu0 %v3141_v38  ;;  %2011 = vmatpush1.bf16.msra.mxu1 %v3144_v39 }
 0x1d8   :  { %1926 = vmatprep.subr.bf16.mxu0 %v3149_v40  ;;  %2012 = vmatprep.subr.bf16.mxu1 %v3152_v41 }
 0x1db   :  { %1927 = vmatpush1.bf16.msra.mxu0 %v3147_v42  ;;  %2013 = vmatpush1.bf16.msra.mxu1 %v3150_v43 }
 0x1dc   :  { %1928 = vmatprep.subr.bf16.mxu0 %v3155_v44  ;;  %2014 = vmatprep.subr.bf16.mxu1 %v3158_v45 }
 0x1df   :  { %1929 = vmatpush1.bf16.msra.mxu0 %v3153_v46  ;;  %2015 = vmatpush1.bf16.msra.mxu1 %v3156_v47 }
 0x1e0   :  { %1930 = vmatprep.subr.bf16.mxu0 %v3161_v48  ;;  %2016 = vmatprep.subr.bf16.mxu1 %v3164_v49 }
 0x1e3   :  { %1931 = vmatpush1.bf16.msra.mxu0 %v3159_v51  ;;  %2017 = vmatpush1.bf16.msra.mxu1 %v3162_v52 }
 0x1e4   :  { %1932 = vmatprep.subr.bf16.mxu0 %v3167_v53  ;;  %2018 = vmatprep.subr.bf16.mxu1 %v3170_v54 }
 0x1e7   :  { %1933 = vmatpush1.bf16.msra.mxu0 %v3165_v55  ;;  %2019 = vmatpush1.bf16.msra.mxu1 %v3168_v56 }
 0x1e8   :  { %2698 = vmatprep.subr.bf16.mxu0 %v3171_v57  ;;  %2720 = vmatprep.subr.bf16.mxu1 %v3172_v58 }
 0x1ea   :  { %1935 = vmatmul.mubr.bf16.vlgmr.msra.gmra.mrb[4].mxu0 %v3452_v50  ;;  %2021 = vmatmul.mubr.bf16.vlgmr.msra.gmra.mrb[4].mxu1 %v3452_v50  ;;  %v3186_v50 = vld [vmem:[#allocation8 + $0x98] sm:$0xff]  }
 0x1eb   :  { %2699 = vmatpush3.bf16.msra.mxu0 %v3173_v59  ;;  %2721 = vmatpush3.bf16.msra.mxu1 %v3174_v60  ;;  %v2665_v60 = vld [vmem:[%s3488_s6] ss:$0 sm:$0xff]  ;;  %s3291_s6 = scalar_lea.vmem %s2396_s9, 256 }
 0x1ec   :  { %2700 = vmatprep.subr.bf16.mxu0 %v3175_v61  ;;  %2722 = vmatprep.subr.bf16.mxu1 %v3176_v62  ;;  %p3292_p4 = scmp.ne.s32.totalorder %s2396_s9, %s3291_s6  ;;  %p3297_p6 = scmp.lt.s32.totalorder %s3291_s6, %s3291_s6 }
 0x1ee   :  { %p3298_p7 = por %p3297_p6, %p3296_p5 }
 0x1ef   :  { %2701 = vmatpush3.bf16.msra.mxu0 %v3177_v63  ;;  %2723 = vmatpush3.bf16.msra.mxu1 %v3178_v0 }
 0x1f0   :  { %2702 = vmatprep.subr.bf16.mxu0 %v3179_v1  ;;  %2724 = vmatprep.subr.bf16.mxu1 %v3180_v2  ;;  %p3299_p8 = pnand %p3298_p7, %p3292_p4 }
 0x1f3   :  { %2703 = vmatpush3.bf16.msra.mxu0 %v3181_v3  ;;  %2725 = vmatpush3.bf16.msra.mxu1 %v3182_v4 }
 0x1f4   :  { %2704 = vmatprep.subr.bf16.mxu0 %v3183_v5  ;;  %2726 = vmatprep.subr.bf16.mxu1 %v3184_v6 }
 0x1f7   :  { %2705 = vmatpush3.bf16.msra.mxu0 %v3185_v7  ;;  %2727 = vmatpush3.bf16.msra.mxu1 %v3186_v50 }
 0x1f8   :  { %2706 = vmatprep.subr.bf16.mxu0 %v3187_v8  ;;  %2728 = vmatprep.subr.bf16.mxu1 %v3188_v9 }
 0x1fb   :  { %2707 = vmatpush3.bf16.msra.mxu0 %v3189_v10  ;;  %2729 = vmatpush3.bf16.msra.mxu1 %v3190_v11 }
 0x1fc   :  { %2708 = vmatprep.subr.bf16.mxu0 %v3191_v12  ;;  %2730 = vmatprep.subr.bf16.mxu1 %v3192_v13 }
 0x1ff   :  { %2709 = vmatpush3.bf16.msra.mxu0 %v3193_v14  ;;  %2731 = vmatpush3.bf16.msra.mxu1 %v3194_v18 }
 0x200   :  { %2710 = vmatprep.subr.bf16.mxu0 %v3195_v21  ;;  %2732 = vmatprep.subr.bf16.mxu1 %v3196_v22 }
 0x203   :  { %2711 = vmatpush3.bf16.msra.mxu0 %v3197_v23  ;;  %2733 = vmatpush3.bf16.msra.mxu1 %v3198_v24 }
 0x204   :  { %2712 = vmatprep.subr.bf16.mxu0 %v3199_v25  ;;  %2734 = vmatprep.subr.bf16.mxu1 %v3200_v26 }
 0x207   :  { %2713 = vmatpush3.bf16.msra.mxu0 %v3201_v27  ;;  %2735 = vmatpush3.bf16.msra.mxu1 %v3202_v28 }
 0x2bd   :  { %v1936_v34 = vpop.f32.mrb[4].mxu0  ;;  %v2022_v35 = vpop.f32.mrb[4].mxu1 }
 0x2be   :  { %v2750_v36 = vadd.f32 %v1936_v34, %v1202_v30  ;;  %v2754_v37 = vadd.f32 %v2022_v35, %v1210_v31  ;;  %v1938_v38 = vpop.f32.mrb[5].mxu0  ;;  %v2024_v39 = vpop.f32.mrb[5].mxu1 }
 0x2bf   :  { %v2751_v40 = vadd.f32 %v1938_v38, %v1206_v32  ;;  %v2755_v41 = vadd.f32 %v2024_v39, %v1214_v33  ;;  %v1940_v42 = vpop.f32.mrb[6].mxu0  ;;  %v2026_v43 = vpop.f32.mrb[6].mxu1 }
 0x2c0   :  { %v2752_v16 = vadd.f32 %v1940_v42, %v1202_v30  ;;  %v2756_v44 = vadd.f32 %v2026_v43, %v1210_v31  ;;  %v1942_v45 = vpop.f32.mrb[7].mxu0  ;;  %v2028_v17 = vpop.f32.mrb[7].mxu1  ;;  %v2031_v19 = vmax.f32 %v2750_v36, 0.0  ;;  %v2033_v48 = vmax.f32 %v2754_v37, 0.0 }
 0x2c1   :  { %v2753_v46 = vadd.f32 %v1942_v45, %v1206_v32  ;;  %v2757_v47 = vadd.f32 %v2028_v17, %v1214_v33  ;;  %v2032_v49 = vmax.f32 %v2751_v40, 0.0  ;;  %v2034_v51 = vmax.f32 %v2755_v41, 0.0 }
 0x2c2   :  { %v2035_v15 = vmax.f32 %v2752_v16, 0.0  ;;  %v2037_v20 = vmax.f32 %v2756_v44, 0.0 }
 0x2c3   :  { %v2036_v52 = vmax.f32 %v2753_v46, 0.0  ;;  %v2038_v53 = vmax.f32 %v2757_v47, 0.0 }
 0x2c4   :  { %v2039_v54 = vpack.c.bf16 %v2035_v15, %v2031_v19  ;;  %v2041_v55 = vpack.c.bf16 %v2037_v20, %v2033_v48 }
 0x2c5   :  { %v2040_v56 = vpack.c.bf16 %v2036_v52, %v2032_v49  ;;  %v2042_v57 = vpack.c.bf16 %v2038_v53, %v2034_v51 }
 0x2c7   :  { %2338 = vmatprep.mubr.bf16.mxu0 %v2040_v56  ;;  %2379 = vmatprep.mubr.bf16.mxu1 %v2042_v57 }
 0x2c8   :  { %2339 = vmatmul.mubr.bf16.vlgmr.msra.gmra.mrb[8].mxu0 %v2039_v54  ;;  %2380 = vmatmul.mubr.bf16.vlgmr.msra.gmra.mrb[8].mxu1 %v2041_v55 }
 0x39b   :  { %v2714_v58 = vpop.f32.mrb[8].mxu0  ;;  %v2736_v59 = vpop.f32.mrb[8].mxu1 }
 0x39c   :  { %v2715_v61 = vpop.f32.mrb[9].mxu0  ;;  %v2737_v62 = vpop.f32.mrb[9].mxu1 }
 0x39d   :  { %v2716_v63 = vadd.f32 %v2715_v61, %v2714_v58  ;;  %v2738_v0 = vadd.f32 %v2737_v62, %v2736_v59  ;;  %v2717_v1 = vpop.f32.mrb[10].mxu0  ;;  %v2739_v2 = vpop.f32.mrb[10].mxu1 }
 0x39e   :  { %v2718_v3 = vpop.f32.mrb[11].mxu0  ;;  %v2740_v4 = vpop.f32.mrb[11].mxu1 }
 0x39f   :  { %v2341_v5 = vadd.f32 %v2716_v63, %v2665_v60  ;;  %v2719_v6 = vadd.f32 %v2718_v3, %v2717_v1  ;;  %v2741_v7 = vadd.f32 %v2740_v4, %v2739_v2 }
 0x3a1   :  { %v2382_v50 = vadd.f32 %v2738_v0, %v2341_v5  ;;  %v2344_v8 = vadd.f32 %v2719_v6, %v2665_v60 }
 0x3a3   :  { %2388 = vst [vmem:[#allocation10] sm:$0xff] %v2382_v50  ;;  %v2385_v9 = vadd.f32 %v2741_v7, %v2344_v8 }
 0x3a5   :  { %2389 = vst [vmem:[#allocation10 + $0x8] sm:$0xff] %v2385_v9 }
 0x3a6   :  { %3302 = shalt.err (!%p3299_p8)
}
 0x3a7   :  { %s3303_s14 = scalar_lea.hbm %s3489_s7, 256 }
 0x3a8   :  { %p3304_p9 = scmp.ne.s32.totalorder %s3489_s7, %s3303_s14  ;;  %p3307_p10 = scmp.lt.u32.totalorder %s3303_s14, %s3489_s7 }
 0x3aa   :  { %p3309_p11 = pnand %p3307_p10, %p3304_p9 }
 0x3ac   :  { %3312 = shalt.err (!%p3309_p11)
}
 0x3ad   :  { %s3332_s16 = smov 128   ;;  %s3333_s19 = smov 8  }
 0x3ae   :  { %2401 = dma.vmem_to_hbm [thread:$0]  %s2396_s9, 256, %s3489_s7, [#allocation4], %s3332_s16, %s3332_s16, %s3333_s19  }
 0x3af   :  { %3319 = dma.done.wait [#allocation4], 256  }
 0x3b0   :  { %3320 = vsyncadd [#allocation4], 4294967040 }
 0x3b1   :  { %2405 = vsyncpa [#allocation3], 1 }
 0x3b2   :  { %2406 = vsyncpa [#allocation6], 1 }
 0x3b3   :  { %2407 = vsyncpa [#allocation9], 1 }
 0x3b4   :  { %2408 = vsyncpa [#allocation4], 1 }

</bundles_post_ra>
